<compile_context>
chip_gen: v7x
topology: tpu7x:2x2x1
jax: 0.10.0
libtpu: 0.0.40
codegen_flags: <defaults>
</compile_context>

<pallas_src>
import functools

import jax
import jax.numpy as jnp
from jax.experimental import pallas as pl
from jax.experimental.pallas import tpu as pltpu


def _round_up(x, m):
    return ((x + m - 1) // m) * m


def _lsh_kernel(num_layers, residual, embed, gated, nonlinearity,
                e_pad, d_pad, mlp_dtype, *refs):
    """refs = (idx, fused_table, W_0..W_{L-1}, b_0..b_{L-1}, out)."""
    idx_ref = refs[0]                                   # (TM, 1) int32
    fused_ref = refs[1]                                 # (E_pad, F) f32 fused table
    w_refs = refs[2:2 + num_layers]                     # each (D_pad, D_pad)
    b_refs = refs[2 + num_layers:2 + 2 * num_layers]    # each (1, D_pad) f32
    out_ref = refs[2 + 2 * num_layers]                  # (TM, D_pad)

    # Fused gather: one-hot(indices) @ [lsh | emb | lane-replicated gate logit].
    # Exact in f32 (a single 1.0*value product per output element).
    idx = idx_ref[...]                                  # (TM, 1)
    tm = idx.shape[0]
    iota = jax.lax.broadcasted_iota(jnp.int32, (tm, e_pad), 1)
    onehot = (idx == iota).astype(jnp.float32)          # (TM, E_pad) lane-dense
    fused = jnp.dot(onehot, fused_ref[...],
                    preferred_element_type=jnp.float32)  # (TM, F)

    x0 = fused[:, :d_pad]                               # LSH rows (zero-padded)

    # MLP stack (padded feature columns stay exactly zero: W/b zero-padded).
    x = x0
    for l in range(num_layers):
        h = jnp.dot(x.astype(mlp_dtype), w_refs[l][...],
                    preferred_element_type=jnp.float32) + b_refs[l][...]
        h = jnp.tanh(h) if nonlinearity == 'tanh' else jnp.maximum(h, 0.0)
        x = x + h if residual else h

    # Optional (gated) embedding mix.
    if embed:
        e = fused[:, d_pad:2 * d_pad]
        if gated:
            # Gate logit was precomputed per table row (lsh @ Wg + bg) and
            # replicated across all d_pad lanes -> pure elementwise gating.
            g = jax.nn.sigmoid(fused[:, 2 * d_pad:3 * d_pad])   # (TM, D_pad)
            x = (1.0 - g) * x + g * e
        else:
            x = x + e

    out_ref[...] = x.astype(out_ref.dtype)


def lsh_embedding_forward(indices, lsh_table, layer_ws, layer_bs,
                          emb_table=None, gate_w=None, gate_b=None,
                          residual_connections=False, embed=False, gated=False,
                          nonlinearity='tanh', row_tile=512,
                          mlp_dtype=jnp.float32):
    """Pallas forward for LSHEmbedding.

    indices:     int32, any shape
    lsh_table:   (num_embeddings, D)  -- the `fit()`-produced table
    layer_ws[l]: (D, D)  pre-transposed (x @ W == torch x @ W.T)
    layer_bs[l]: (1, D)
    emb_table:   (num_embeddings, D)  (if embed)
    gate_w:      (D, 1), gate_b: (1, 1)  (if embed and gated)
    mlp_dtype:   jnp.float32 (default, exact) or jnp.bfloat16 (faster MXU on
                 v6e/v7x; loosen the tolerance on that path)
    returns:     float32, indices.shape + (D,)
    """
    num_embeddings, dim = lsh_table.shape
    num_layers = len(layer_ws)
    original_shape = indices.shape

    # --- lane-pad the feature dim to a multiple of 128 (lane-dense VPU/stores)
    d_pad = _round_up(dim, 128)
    pad_f = d_pad - dim
    lsh_p = jnp.pad(lsh_table.astype(jnp.float32), ((0, 0), (0, pad_f)))
    ws_p = [jnp.pad(w.astype(jnp.float32),
                    ((0, pad_f), (0, pad_f))).astype(mlp_dtype)
            for w in layer_ws]
    bs_p = [jnp.pad(b.astype(jnp.float32), ((0, 0), (0, pad_f)))
            for b in layer_bs]

    # --- fused gather table: [lsh | emb | lane-replicated gate logit] --------
    sections = [lsh_p]
    if embed:
        sections.append(jnp.pad(emb_table.astype(jnp.float32),
                                ((0, 0), (0, pad_f))))
        if gated:
            gate_logit = lsh_table.astype(jnp.float32) @ gate_w + gate_b  # (E,1)
            sections.append(jnp.tile(gate_logit, (1, d_pad)))             # (E,D_pad)
    fused_table = jnp.concatenate(sections, axis=1)
    f_width = _round_up(fused_table.shape[1], 128)
    fused_table = jnp.pad(fused_table,
                          ((0, 0), (0, f_width - fused_table.shape[1])))
    # Pad the row (vocabulary) axis to a multiple of 128 so the one-hot
    # compare/cast and the MXU K dimension are lane-dense.
    e_pad = _round_up(num_embeddings, 128)
    fused_table = jnp.pad(fused_table, ((0, e_pad - num_embeddings), (0, 0)))

    # --- flatten indices; adaptive row tile ----------------------------------
    flat_idx = indices.reshape(-1).astype(jnp.int32)
    n = flat_idx.shape[0]
    # Large tiles amortize the ~0.35us/step overhead; for small n shrink the
    # tile so the "parallel" grid still has >= 2 steps (keeps v7x's second
    # TensorCore busy) and padding waste stays small.
    row_tile = int(min(row_tile, max(8, _round_up((n + 1) // 2, 8))))
    n_pad = _round_up(n, row_tile)
    flat_idx = jnp.pad(flat_idx, (0, n_pad - n)).reshape(n_pad, 1)
    grid_steps = n_pad // row_tile

    operands = [flat_idx, fused_table] + list(ws_p) + list(bs_p)
    kernel = functools.partial(_lsh_kernel, num_layers, residual_connections,
                               embed, gated, nonlinearity, e_pad, d_pad,
                               mlp_dtype)

    # --- explicit VMEM budget (v5e's default scoped limit is only 16 MiB) ----
    inv_bytes = (fused_table.size * fused_table.dtype.itemsize
                 + sum(w.size * w.dtype.itemsize for w in ws_p)
                 + sum(b.size * b.dtype.itemsize for b in bs_p))
    tile_bytes = 2 * (row_tile * 1 * 4 + row_tile * d_pad * 4)  # idx + out, x2 buf
    vmem_limit = int(min(max(2 * (inv_bytes + tile_bytes) + (2 << 20), 8 << 20),
                         64 << 20))   # 64 MiB cap fits v5e / v6e / v7x alike

    # --- advisory cost hint (invariant tables are DMA'd once, not per step) --
    flops = 2 * n_pad * (e_pad * f_width + num_layers * d_pad * d_pad)
    transcendentals = n_pad * d_pad * (num_layers
                                       + (1 if (embed and gated) else 0))
    bytes_accessed = flat_idx.size * 4 + n_pad * d_pad * 4 + inv_bytes
    cost = pl.CostEstimate(flops=int(flops),
                           transcendentals=int(transcendentals),
                           bytes_accessed=int(bytes_accessed))

    def build(single_buffer_invariants):
        if single_buffer_invariants:
            inv_spec = lambda shape: pl.BlockSpec(
                shape, lambda i: (0,) * len(shape),
                pipeline_mode=pl.Buffered(1))
        else:
            inv_spec = lambda shape: pl.BlockSpec(
                shape, lambda i: (0,) * len(shape))
        in_specs = [
            pl.BlockSpec((row_tile, 1), lambda i: (i, 0)),     # row-tiled indices
            inv_spec((e_pad, f_width)),                        # fused table
        ]
        in_specs += [inv_spec((d_pad, d_pad)) for _ in range(num_layers)]
        in_specs += [inv_spec((1, d_pad)) for _ in range(num_layers)]
        return pl.pallas_call(
            kernel,
            out_shape=jax.ShapeDtypeStruct((n_pad, d_pad), jnp.float32),
            grid_spec=pltpu.PrefetchScalarGridSpec(
                num_scalar_prefetch=0,
                grid=(grid_steps,),
                in_specs=in_specs,
                out_specs=pl.BlockSpec((row_tile, d_pad), lambda i: (i, 0)),
            ),
            compiler_params=pltpu.CompilerParams(
                dimension_semantics=("parallel",),
                vmem_limit_bytes=vmem_limit),
            cost_estimate=cost,
        )

    try:
        # Grid-invariant operands single-buffered: their block index never
        # changes, so the default second pipeline buffer is pure VMEM waste.
        out = build(True)(*operands)
    except Exception:
        # Fallback: this jax/TPU build rejects pipeline_mode=Buffered(1);
        # identical semantics with default double-buffering.
        out = build(False)(*operands)

    return out[:n, :dim].reshape(original_shape + (dim,))


def _reference_forward(indices, lsh_table, layer_ws, layer_bs, emb_table,
                       gate_w, gate_b, residual, embed, gated, nonlinearity):
    """Pure-JAX reference mirroring the PyTorch forward."""
    flat = indices.reshape(-1)
    x0 = jnp.take(lsh_table, flat, axis=0)
    x = x0
    nonlin = jnp.tanh if nonlinearity == 'tanh' else jax.nn.relu
    for w, b in zip(layer_ws, layer_bs):
        h = nonlin(x @ w + b)
        x = x + h if residual else h
    if embed:
        e = jnp.take(emb_table, flat, axis=0)
        if gated:
            g = jax.nn.sigmoid(x0 @ gate_w + gate_b)
            x = (1.0 - g) * x + g * e
        else:
            x = x + e
    return x.reshape(indices.shape + (lsh_table.shape[1],))


if __name__ == "__main__":
    # small, module-consistent shapes
    num_embeddings = 64
    embedding_dim = 32
    num_hash_functions = 4
    num_layers = 2
    batch, seq = 2, 8
    residual, embed, gated = True, True, True
    nonlinearity = 'tanh'

    key = jax.random.PRNGKey(0)
    keys = jax.random.split(key, 8 + 2 * num_layers)

    # Synthetic stand-in for `fit()`: num_hash_functions hits per row, then
    # row-normalize by max(||row||, 1) exactly as fit() does.
    # TODO(synk): murmurhash3_32-based fit() is host-side preprocessing, not
    # part of the forward pass; replaced with a deterministic synthetic table.
    hit_cols = jax.random.randint(keys[0], (num_embeddings, num_hash_functions),
                                  0, embedding_dim)
    onehots = jax.nn.one_hot(hit_cols, embedding_dim, dtype=jnp.float32)
    lsh_table = jnp.clip(jnp.sum(onehots, axis=1), 0.0, None)
    norms = jnp.maximum(jnp.linalg.norm(lsh_table, axis=1, keepdims=True), 1.0)
    lsh_table = lsh_table / norms

    # Linear layers (PyTorch Linear -> pass W pre-transposed as [in, out]).
    layer_ws, layer_bs = [], []
    for l in range(num_layers):
        w = jax.random.normal(keys[1 + 2 * l], (embedding_dim, embedding_dim),
                              jnp.float32) * 0.1
        b = jax.random.normal(keys[2 + 2 * l], (1, embedding_dim),
                              jnp.float32) * 0.1
        layer_ws.append(w)
        layer_bs.append(b)

    # ScaledEmbedding table (~ normal / embedding_dim init) and gate Linear.
    emb_table = jax.random.normal(keys[5], (num_embeddings, embedding_dim),
                                  jnp.float32) / embedding_dim
    gate_w = jax.random.normal(keys[6], (embedding_dim, 1), jnp.float32) * 0.1
    gate_b = jnp.zeros((1, 1), jnp.float32)

    indices = jax.random.randint(keys[7], (batch, seq), 0, num_embeddings,
                                 dtype=jnp.int32)

    out = lsh_embedding_forward(
        indices, lsh_table, layer_ws, layer_bs,
        emb_table=emb_table, gate_w=gate_w, gate_b=gate_b,
        residual_connections=residual, embed=embed, gated=gated,
        nonlinearity=nonlinearity)
    out = jax.block_until_ready(out)

    ref = _reference_forward(indices, lsh_table, layer_ws, layer_bs, emb_table,
                             gate_w, gate_b, residual, embed, gated,
                             nonlinearity)

    assert out.shape == (batch, seq, embedding_dim), out.shape
    assert jnp.allclose(out, ref, atol=1e-5, rtol=1e-5), \
        float(jnp.max(jnp.abs(out - ref)))
    print("KERNEL_OK")
</pallas_src>

<mosaic_0001>
module attributes {stable_mosaic.version = 11 : i64} {
  func.func @_lsh_kernel(%arg0: i32, %arg1: memref<8x1xi32, #tpu.memory_space<vmem>>, %arg2: memref<128x384xf32, #tpu.memory_space<vmem>>, %arg3: memref<128x128xf32, #tpu.memory_space<vmem>>, %arg4: memref<128x128xf32, #tpu.memory_space<vmem>>, %arg5: memref<1x128xf32, #tpu.memory_space<vmem>>, %arg6: memref<1x128xf32, #tpu.memory_space<vmem>>, %arg7: memref<8x128xf32, #tpu.memory_space<vmem>>) attributes {dimension_semantics = [#tpu.dimension_semantics<parallel>], iteration_bounds = array<i64: 2>, scalar_prefetch = 0 : i64, scratch_operands = 0 : i64, tpu.core_type = #tpu.core_type<tc>, window_params = [{transform_indices = @transform_0, window_bounds = array<i64: 8, 1>}, {pipeline_mode = #tpu.pipeline_mode<synchronous>, transform_indices = @transform_1, window_bounds = array<i64: 128, 384>}, {pipeline_mode = #tpu.pipeline_mode<synchronous>, transform_indices = @transform_2, window_bounds = array<i64: 128, 128>}, {pipeline_mode = #tpu.pipeline_mode<synchronous>, transform_indices = @transform_3, window_bounds = array<i64: 128, 128>}, {pipeline_mode = #tpu.pipeline_mode<synchronous>, transform_indices = @transform_4, window_bounds = array<i64: 1, 128>}, {pipeline_mode = #tpu.pipeline_mode<synchronous>, transform_indices = @transform_5, window_bounds = array<i64: 1, 128>}, {transform_indices = @transform_6, window_bounds = array<i64: 8, 128>}]} {
    %c0 = arith.constant 0 : index
    %c0_0 = arith.constant 0 : index
    %0 = vector.load %arg1[%c0, %c0_0] : memref<8x1xi32, #tpu.memory_space<vmem>>, vector<8x1xi32>
    %1 = tpu.iota {dimensions = array<i32: 1>} : vector<8x128xi32>
    %2 = vector.broadcast %0 : vector<8x1xi32> to vector<8x128xi32>
    %3 = arith.cmpi eq, %2, %1 : vector<8x128xi32>
    %4 = arith.extui %3 : vector<8x128xi1> to vector<8x128xi32>
    %5 = arith.sitofp %4 : vector<8x128xi32> to vector<8x128xf32>
    %c0_1 = arith.constant 0 : index
    %c0_2 = arith.constant 0 : index
    %6 = vector.load %arg2[%c0_1, %c0_2] : memref<128x384xf32, #tpu.memory_space<vmem>>, vector<128x384xf32>
    %cst = arith.constant dense<0.000000e+00> : vector<8x384xf32>
    %7 = tpu.matmul %5, %6, %cst {dimension_numbers = #tpu.dot_dimension_numbers<[1], [0], [0], [1], [0, 0, 1, 1], [], []>} : vector<8x128xf32>, vector<128x384xf32>, vector<8x384xf32> -> vector<8x384xf32>
    %8 = vector.extract_strided_slice %7 {offsets = [0, 0], sizes = [8, 128], strides = [1, 1]} : vector<8x384xf32> to vector<8x128xf32>
    %c0_3 = arith.constant 0 : index
    %c0_4 = arith.constant 0 : index
    %9 = vector.load %arg3[%c0_3, %c0_4] : memref<128x128xf32, #tpu.memory_space<vmem>>, vector<128x128xf32>
    %cst_5 = arith.constant dense<0.000000e+00> : vector<8x128xf32>
    %10 = tpu.matmul %8, %9, %cst_5 {dimension_numbers = #tpu.dot_dimension_numbers<[1], [0], [0], [1], [0, 0, 1, 1], [], []>} : vector<8x128xf32>, vector<128x128xf32>, vector<8x128xf32> -> vector<8x128xf32>
    %c0_6 = arith.constant 0 : index
    %c0_7 = arith.constant 0 : index
    %11 = vector.load %arg5[%c0_6, %c0_7] : memref<1x128xf32, #tpu.memory_space<vmem>>, vector<1x128xf32>
    %12 = vector.broadcast %11 : vector<1x128xf32> to vector<8x128xf32>
    %13 = arith.addf %10, %12 : vector<8x128xf32>
    %14 = math.tanh %13 : vector<8x128xf32>
    %15 = arith.addf %8, %14 : vector<8x128xf32>
    %c0_8 = arith.constant 0 : index
    %c0_9 = arith.constant 0 : index
    %16 = vector.load %arg4[%c0_8, %c0_9] : memref<128x128xf32, #tpu.memory_space<vmem>>, vector<128x128xf32>
    %cst_10 = arith.constant dense<0.000000e+00> : vector<8x128xf32>
    %17 = tpu.matmul %15, %16, %cst_10 {dimension_numbers = #tpu.dot_dimension_numbers<[1], [0], [0], [1], [0, 0, 1, 1], [], []>} : vector<8x128xf32>, vector<128x128xf32>, vector<8x128xf32> -> vector<8x128xf32>
    %c0_11 = arith.constant 0 : index
    %c0_12 = arith.constant 0 : index
    %18 = vector.load %arg6[%c0_11, %c0_12] : memref<1x128xf32, #tpu.memory_space<vmem>>, vector<1x128xf32>
    %19 = vector.broadcast %18 : vector<1x128xf32> to vector<8x128xf32>
    %20 = arith.addf %17, %19 : vector<8x128xf32>
    %21 = math.tanh %20 : vector<8x128xf32>
    %22 = arith.addf %15, %21 : vector<8x128xf32>
    %23 = vector.extract_strided_slice %7 {offsets = [0, 128], sizes = [8, 128], strides = [1, 1]} : vector<8x384xf32> to vector<8x128xf32>
    %24 = vector.extract_strided_slice %7 {offsets = [0, 256], sizes = [8, 128], strides = [1, 1]} : vector<8x384xf32> to vector<8x128xf32>
    %25 = arith.negf %24 : vector<8x128xf32>
    %26 = math.exp %25 : vector<8x128xf32>
    %cst_13 = arith.constant 1.000000e+00 : f32
    %27 = vector.broadcast %cst_13 : f32 to vector<8x128xf32>
    %28 = arith.addf %27, %26 : vector<8x128xf32>
    %29 = arith.divf %27, %28 : vector<8x128xf32>
    %cst_14 = arith.constant 1.000000e+00 : f32
    %30 = vector.broadcast %cst_14 : f32 to vector<8x128xf32>
    %31 = arith.subf %30, %29 : vector<8x128xf32>
    %32 = arith.mulf %31, %22 : vector<8x128xf32>
    %33 = arith.mulf %29, %23 : vector<8x128xf32>
    %34 = arith.addf %32, %33 : vector<8x128xf32>
    %c0_15 = arith.constant 0 : index
    %c0_16 = arith.constant 0 : index
    %35 = vector.load %arg7[%c0_15, %c0_16] : memref<8x128xf32, #tpu.memory_space<vmem>>, vector<8x128xf32>
    tpu.vector_store %arg7[%c0_15, %c0_16], %34 {strides = array<i32>} : memref<8x128xf32, #tpu.memory_space<vmem>>, vector<8x128xf32>,
    return
  }
  func.func @transform_0(%arg0: i32) -> (i32, i32) {
    %c0_i32 = arith.constant 0 : i32
    %c0_i32_0 = arith.constant 0 : i32
    return %arg0, %c0_i32 : i32, i32
  }
  func.func @transform_1(%arg0: i32) -> (i32, i32) {
    %c0_i32 = arith.constant 0 : i32
    %c0_i32_0 = arith.constant 0 : i32
    %c0_i32_1 = arith.constant 0 : i32
    return %c0_i32, %c0_i32_0 : i32, i32
  }
  func.func @transform_2(%arg0: i32) -> (i32, i32) {
    %c0_i32 = arith.constant 0 : i32
    %c0_i32_0 = arith.constant 0 : i32
    %c0_i32_1 = arith.constant 0 : i32
    return %c0_i32, %c0_i32_0 : i32, i32
  }
  func.func @transform_3(%arg0: i32) -> (i32, i32) {
    %c0_i32 = arith.constant 0 : i32
    %c0_i32_0 = arith.constant 0 : i32
    %c0_i32_1 = arith.constant 0 : i32
    return %c0_i32, %c0_i32_0 : i32, i32
  }
  func.func @transform_4(%arg0: i32) -> (i32, i32) {
    %c0_i32 = arith.constant 0 : i32
    %c0_i32_0 = arith.constant 0 : i32
    %c0_i32_1 = arith.constant 0 : i32
    return %c0_i32, %c0_i32_0 : i32, i32
  }
  func.func @transform_5(%arg0: i32) -> (i32, i32) {
    %c0_i32 = arith.constant 0 : i32
    %c0_i32_0 = arith.constant 0 : i32
    %c0_i32_1 = arith.constant 0 : i32
    return %c0_i32, %c0_i32_0 : i32, i32
  }
  func.func @transform_6(%arg0: i32) -> (i32, i32) {
    %c0_i32 = arith.constant 0 : i32
    %c0_i32_0 = arith.constant 0 : i32
    return %arg0, %c0_i32 : i32, i32
  }
}

module attributes {stable_mosaic.version = 11 : i64} {
  func.func @_lsh_kernel(%arg0: i32, %arg1: memref<8x1xi32, #tpu.memory_space<vmem>>, %arg2: memref<128x384xf32, #tpu.memory_space<vmem>>, %arg3: memref<128x128xf32, #tpu.memory_space<vmem>>, %arg4: memref<128x128xf32, #tpu.memory_space<vmem>>, %arg5: memref<1x128xf32, #tpu.memory_space<vmem>>, %arg6: memref<1x128xf32, #tpu.memory_space<vmem>>, %arg7: memref<8x128xf32, #tpu.memory_space<vmem>>) attributes {dimension_semantics = [#tpu.dimension_semantics<parallel>], iteration_bounds = array<i64: 2>, scalar_prefetch = 0 : i64, scratch_operands = 0 : i64, tpu.core_type = #tpu.core_type<tc>, window_params = [{transform_indices = @transform_0, window_bounds = array<i64: 8, 1>}, {pipeline_mode = #tpu.pipeline_mode<synchronous>, transform_indices = @transform_1, window_bounds = array<i64: 128, 384>}, {pipeline_mode = #tpu.pipeline_mode<synchronous>, transform_indices = @transform_2, window_bounds = array<i64: 128, 128>}, {pipeline_mode = #tpu.pipeline_mode<synchronous>, transform_indices = @transform_3, window_bounds = array<i64: 128, 128>}, {pipeline_mode = #tpu.pipeline_mode<synchronous>, transform_indices = @transform_4, window_bounds = array<i64: 1, 128>}, {pipeline_mode = #tpu.pipeline_mode<synchronous>, transform_indices = @transform_5, window_bounds = array<i64: 1, 128>}, {transform_indices = @transform_6, window_bounds = array<i64: 8, 128>}]} {
    %c0 = arith.constant 0 : index
    %c0_0 = arith.constant 0 : index
    %0 = vector.load %arg1[%c0, %c0_0] : memref<8x1xi32, #tpu.memory_space<vmem>>, vector<8x1xi32>
    %1 = tpu.iota {dimensions = array<i32: 1>} : vector<8x128xi32>
    %2 = vector.broadcast %0 : vector<8x1xi32> to vector<8x128xi32>
    %3 = arith.cmpi eq, %2, %1 : vector<8x128xi32>
    %4 = arith.extui %3 : vector<8x128xi1> to vector<8x128xi32>
    %5 = arith.sitofp %4 : vector<8x128xi32> to vector<8x128xf32>
    %c0_1 = arith.constant 0 : index
    %c0_2 = arith.constant 0 : index
    %6 = vector.load %arg2[%c0_1, %c0_2] : memref<128x384xf32, #tpu.memory_space<vmem>>, vector<128x384xf32>
    %cst = arith.constant dense<0.000000e+00> : vector<8x384xf32>
    %7 = tpu.matmul %5, %6, %cst {dimension_numbers = #tpu.dot_dimension_numbers<[1], [0], [0], [1], [0, 0, 1, 1], [], []>} : vector<8x128xf32>, vector<128x384xf32>, vector<8x384xf32> -> vector<8x384xf32>
    %8 = vector.extract_strided_slice %7 {offsets = [0, 0], sizes = [8, 128], strides = [1, 1]} : vector<8x384xf32> to vector<8x128xf32>
    %c0_3 = arith.constant 0 : index
    %c0_4 = arith.constant 0 : index
    %9 = vector.load %arg3[%c0_3, %c0_4] : memref<128x128xf32, #tpu.memory_space<vmem>>, vector<128x128xf32>
    %cst_5 = arith.constant dense<0.000000e+00> : vector<8x128xf32>
    %10 = tpu.matmul %8, %9, %cst_5 {dimension_numbers = #tpu.dot_dimension_numbers<[1], [0], [0], [1], [0, 0, 1, 1], [], []>} : vector<8x128xf32>, vector<128x128xf32>, vector<8x128xf32> -> vector<8x128xf32>
    %c0_6 = arith.constant 0 : index
    %c0_7 = arith.constant 0 : index
    %11 = vector.load %arg5[%c0_6, %c0_7] : memref<1x128xf32, #tpu.memory_space<vmem>>, vector<1x128xf32>
    %12 = vector.broadcast %11 : vector<1x128xf32> to vector<8x128xf32>
    %13 = arith.addf %10, %12 : vector<8x128xf32>
    %14 = math.tanh %13 : vector<8x128xf32>
    %15 = arith.addf %8, %14 : vector<8x128xf32>
    %c0_8 = arith.constant 0 : index
    %c0_9 = arith.constant 0 : index
    %16 = vector.load %arg4[%c0_8, %c0_9] : memref<128x128xf32, #tpu.memory_space<vmem>>, vector<128x128xf32>
    %cst_10 = arith.constant dense<0.000000e+00> : vector<8x128xf32>
    %17 = tpu.matmul %15, %16, %cst_10 {dimension_numbers = #tpu.dot_dimension_numbers<[1], [0], [0], [1], [0, 0, 1, 1], [], []>} : vector<8x128xf32>, vector<128x128xf32>, vector<8x128xf32> -> vector<8x128xf32>
    %c0_11 = arith.constant 0 : index
    %c0_12 = arith.constant 0 : index
    %18 = vector.load %arg6[%c0_11, %c0_12] : memref<1x128xf32, #tpu.memory_space<vmem>>, vector<1x128xf32>
    %19 = vector.broadcast %18 : vector<1x128xf32> to vector<8x128xf32>
    %20 = arith.addf %17, %19 : vector<8x128xf32>
    %21 = math.tanh %20 : vector<8x128xf32>
    %22 = arith.addf %15, %21 : vector<8x128xf32>
    %23 = vector.extract_strided_slice %7 {offsets = [0, 128], sizes = [8, 128], strides = [1, 1]} : vector<8x384xf32> to vector<8x128xf32>
    %24 = vector.extract_strided_slice %7 {offsets = [0, 256], sizes = [8, 128], strides = [1, 1]} : vector<8x384xf32> to vector<8x128xf32>
    %25 = arith.negf %24 : vector<8x128xf32>
    %26 = math.exp %25 : vector<8x128xf32>
    %cst_13 = arith.constant 1.000000e+00 : f32
    %27 = vector.broadcast %cst_13 : f32 to vector<8x128xf32>
    %28 = arith.addf %27, %26 : vector<8x128xf32>
    %29 = arith.divf %27, %28 : vector<8x128xf32>
    %cst_14 = arith.constant 1.000000e+00 : f32
    %30 = vector.broadcast %cst_14 : f32 to vector<8x128xf32>
    %31 = arith.subf %30, %29 : vector<8x128xf32>
    %32 = arith.mulf %31, %22 : vector<8x128xf32>
    %33 = arith.mulf %29, %23 : vector<8x128xf32>
    %34 = arith.addf %32, %33 : vector<8x128xf32>
    %c0_15 = arith.constant 0 : index
    %c0_16 = arith.constant 0 : index
    %35 = vector.load %arg7[%c0_15, %c0_16] : memref<8x128xf32, #tpu.memory_space<vmem>>, vector<8x128xf32>
    tpu.vector_store %arg7[%c0_15, %c0_16], %34 {strides = array<i32>} : memref<8x128xf32, #tpu.memory_space<vmem>>, vector<8x128xf32>,
    return
  }
  func.func @transform_0(%arg0: i32) -> (i32, i32) {
    %c0_i32 = arith.constant 0 : i32
    %c0_i32_0 = arith.constant 0 : i32
    return %arg0, %c0_i32 : i32, i32
  }
  func.func @transform_1(%arg0: i32) -> (i32, i32) {
    %c0_i32 = arith.constant 0 : i32
    %c0_i32_0 = arith.constant 0 : i32
    %c0_i32_1 = arith.constant 0 : i32
    return %c0_i32, %c0_i32_0 : i32, i32
  }
  func.func @transform_2(%arg0: i32) -> (i32, i32) {
    %c0_i32 = arith.constant 0 : i32
    %c0_i32_0 = arith.constant 0 : i32
    %c0_i32_1 = arith.constant 0 : i32
    return %c0_i32, %c0_i32_0 : i32, i32
  }
  func.func @transform_3(%arg0: i32) -> (i32, i32) {
    %c0_i32 = arith.constant 0 : i32
    %c0_i32_0 = arith.constant 0 : i32
    %c0_i32_1 = arith.constant 0 : i32
    return %c0_i32, %c0_i32_0 : i32, i32
  }
  func.func @transform_4(%arg0: i32) -> (i32, i32) {
    %c0_i32 = arith.constant 0 : i32
    %c0_i32_0 = arith.constant 0 : i32
    %c0_i32_1 = arith.constant 0 : i32
    return %c0_i32, %c0_i32_0 : i32, i32
  }
  func.func @transform_5(%arg0: i32) -> (i32, i32) {
    %c0_i32 = arith.constant 0 : i32
    %c0_i32_0 = arith.constant 0 : i32
    %c0_i32_1 = arith.constant 0 : i32
    return %c0_i32, %c0_i32_0 : i32, i32
  }
  func.func @transform_6(%arg0: i32) -> (i32, i32) {
    %c0_i32 = arith.constant 0 : i32
    %c0_i32_0 = arith.constant 0 : i32
    return %arg0, %c0_i32 : i32, i32
  }
}

</mosaic_0001>

<bundles_post_ra>
// kernel: tpu_custom_call.1
= control target key start
LH: loop header
LB: loop body
LE: loop exit
PB: predicated region body
PF: predicated region fallthrough
CT: control target
= control target key end

     0   :  { %s1601_s0 = inlined_call_operand.vmem [shape: s32[16,1], index: 0, kind: input, shape index: {}]   ;;  %s1602_s1 = inlined_call_operand.hbm [shape: f32[128,384], index: 1, kind: input, shape index: {}]   ;;  %s1603_s2 = inlined_call_operand.hbm [shape: f32[128,128], index: 2, kind: input, shape index: {}]   ;;  %s1604_s3 = inlined_call_operand.hbm [shape: f32[128,128], index: 3, kind: input, shape index: {}]   ;;  %s1605_s4 = inlined_call_operand.vmem [shape: f32[1,128], index: 4, kind: input, shape index: {}]   ;;  %s1606_s5 = inlined_call_operand.vmem [shape: f32[1,128], index: 5, kind: input, shape index: {}]   ;;  %s1607_s6 = inlined_call_operand.hbm [shape: f32[16,128], index: 6, kind: output, shape index: {}]  }
   0x1   :  { %1613 = sst [smem:[#allocation13_spill]] %s1603_s2 }
   0x2   :  { %11 = vsyncpa [#allocation3], 0 }
   0x3   :  { %12 = vsyncpa [#allocation6], 0 }
   0x4   :  { %13 = vsyncpa [#allocation4], 0 }
   0x5   :  { %15 = vsyncpa [#allocation4 + $0x1], 0  ;;  %s1368_s21 = smov 0   ;;  %s1370_s22 = smov 0  }
   0x6   :  { %s1372_s23 = smov 0   ;;  %s1374_s24 = smov 0  }
   0x7 LB: > { %s1389_s25 = sadd.s32 4294967295, %s1318_s24   ;;  %s794_s26 = sadd.s32 4294967294, %s1318_s24   ;;  %s1318_s24 = sphi %s1374_s24, %s1634_s24   ;;  %s1314_s23 = sphi %s1372_s23, %s1633_s23   ;;  %s1310_s22 = sphi %s1370_s22, %s1632_s22   ;;  %s1306_s21 = sphi %s1368_s21, %s1631_s21  }
   0x8   : > { %s1393_s27 = sadd.s32 1, %s1318_s24   ;;  %s159_s28 = sadd.s32 1, %s1314_s23 }
   0x9   : > { %s156_s29 = ssub.s32 %s1318_s24, %s1393_s27  ;;  %p169_p0 = scmp.ne.s32.totalorder %s1314_s23, %s1310_s22 }
   0xa   : > { %p157_p1 = scmp.eq.s32.totalorder %s156_s29, 0  ;;  %p170_p2 = scmp.eq.s32.totalorder %s1389_s25, 1 }
   0xb   : > { %p175_p3 = scmp.ne.s32.totalorder %s1310_s22, %s1306_s21  ;;  %p176_p4 = scmp.eq.s32.totalorder %s794_s26, 1 }
   0xc   : > { %s1404_s30 = scalar_select %p157_p1, %s1314_s23, %s159_s28  }
   0xd   : > { %p1406_p5 = por %p170_p2, %p169_p0  ;;  %p1410_p6 = por %p176_p4, %p175_p3 }
   0xe   : > { %1614 = sst [smem:[#allocation12_spill]] %s1404_s30  ;;  %p795_p7 = scmp.ge.s32.totalorder %s1318_s24, 1 }
   0xf   : > { %s1615_s7 = scalar_select %p1406_p5, 1, 0 }
  0x10   : > { %s1616_s8 = scalar_select %p1410_p6, 1, 0 }
  0x11   : > { %p183_p8 = scmp.lt.s32.totalorder %s1318_s24, 3  ;;  %p1608_p9 = scmp.eq.s32.totalorder %s1389_s25, 0 }
  0x12   : > { %s1320_s10 = smov [#allocation5]   ;;  %s1321_s13 = smov [#allocation2]  }
  0x13   : > { %p1417_p10 = pnand %p795_p7, %p183_p8  ;;  %s208_s11 = sshll.u32 %s1320_s10, 4  ;;  %s209_s11 = int_to_ptr.vmem [resolvable:$true] %s208_s11 }
  0x14   : > { %s195_s14 = sshll.u32 %s1321_s13, 4  ;;  %s1619_s2 = sld [smem:[#allocation13_spill]]  ;;  %s1429_s14 = int_to_ptr.vmem [resolvable:$true] %s195_s14 }
  0x15   : > { %s1617_s9 = scalar_select %p1417_p10, 1, 0 }
  0x16   : > { %p1090_p11 = pneg %p1417_p10 }
  0x18   : > { %p1425_p12 = pnand %p1608_p9, %p1090_p11 }
  0x1a   : > { %s1164_s17 = scalar_lea.hbm %s1619_s2, 2048  ;;  %p1439_p0 = pneg %p1425_p12 }
  0x1b   : > { %p1165_p13 = scmp.ne.s32.totalorder %s1619_s2, %s1164_s17  ;;  %p1171_p3 = scmp.lt.u32.totalorder %s1164_s17, %s1619_s2 }
  0x1d   : > { %p1167_p1 = pnand %p1439_p0, %p1165_p13 }
  0x1f   : > { %p1168_p2 = pneg %p1167_p1 }
  0x21   : > { %p1173_p4 = pnand %p1171_p3, %p1168_p2 }
  0x23   : > { %1176 = shalt.err (!%p1173_p4)
}
  0x24   : > { %s1177_s29 = scalar_lea.vmem %s209_s11, 2048  ;;  %p1185_p9 = scmp.lt.s32.totalorder %s209_s11, %s209_s11 }
  0x25   : > { %p1178_p7 = scmp.ne.s32.totalorder %s209_s11, %s1177_s29  ;;  %p1186_p6 = scmp.lt.s32.totalorder %s1177_s29, %s1177_s29 }
  0x27   : > { %p1180_p8 = pnand %p1178_p7, %p1439_p0  ;;  %p1187_p5 = por %p1186_p6, %p1185_p9 }
  0x29   : > { %p1181_p11 = pneg %p1180_p8 }
  0x2b   : > { %p1188_p10 = pnand %p1187_p5, %p1181_p11 }
  0x2d   : > { %1191 = shalt.err (!%p1188_p10)
}
  0x2e   : > { %s1611_s10 = smov 128   ;;  %s1612_s13 = smov 8  }
  0x2f   : > { %1096 = dma.hbm_to_vmem [thread:$0]  (!%p1425_p12), %s1619_s2, 2048, %s209_s11, [#allocation6], %s1611_s10, %s1611_s10, %s1612_s13  }
  0x30   : > { %s1192_s19 = scalar_lea.hbm %s1602_s1, 6144 }
  0x31   : > { %p1193_p5 = scmp.ne.s32.totalorder %s1602_s1, %s1192_s19  ;;  %p1199_p10 = scmp.lt.u32.totalorder %s1192_s19, %s1602_s1 }
  0x33   : > { %p1195_p6 = pnand %p1193_p5, %p1439_p0 }
  0x35   : > { %p1196_p9 = pneg %p1195_p6 }
  0x37   : > { %p1201_p13 = pnand %p1199_p10, %p1196_p9 }
  0x39   : > { %1204 = shalt.err (!%p1201_p13)
}
  0x3a   : > { %s1205_s11 = scalar_lea.vmem %s1429_s14, 6144  ;;  %p1213_p4 = scmp.lt.s32.totalorder %s1429_s14, %s1429_s14 }
  0x3b   : > { %p1206_p1 = scmp.ne.s32.totalorder %s1429_s14, %s1205_s11  ;;  %p1214_p7 = scmp.lt.s32.totalorder %s1205_s11, %s1205_s11 }
  0x3d   : > { %p1208_p2 = pnand %p1206_p1, %p1439_p0  ;;  %p1215_p8 = por %p1214_p7, %p1213_p4 }
  0x3f   : > { %p1209_p3 = pneg %p1208_p2 }
  0x41   : > { %p1216_p11 = pnand %p1215_p8, %p1209_p3 }
  0x43   : > { %1219 = shalt.err (!%p1216_p11)
}
  0x44   : > { %s1324_s15 = smov 384   ;;  %s1325_s30 = smov 24  }
  0x45   : > { %1093 = dma.hbm_to_vmem [thread:$0]  (!%p1425_p12), %s1602_s1, 6144, %s1429_s14, [#allocation3], %s1324_s15, %s1324_s15, %s1325_s30  }
  0x46   : > { %s1326_s18 = smov [#allocation7]   ;;  %s1220_s29 = scalar_lea.hbm %s1604_s3, 2048 }
  0x47   : > { %s221_s19 = sshll.u32 %s1326_s18, 4  ;;  %p1221_p5 = scmp.ne.s32.totalorder %s1604_s3, %s1220_s29  ;;  %s222_s19 = int_to_ptr.vmem [resolvable:$true] %s221_s19 }
  0x48   : > { %p1227_p10 = scmp.lt.u32.totalorder %s1220_s29, %s1604_s3 }
  0x49   : > { %p1223_p6 = pnand %p1221_p5, %p1439_p0 }
  0x4b   : > { %p1224_p9 = pneg %p1223_p6 }
  0x4d   : > { %p1229_p13 = pnand %p1227_p10, %p1224_p9 }
  0x4f   : > { %1232 = shalt.err (!%p1229_p13)
}
  0x50   : > { %s1233_s14 = scalar_lea.vmem %s222_s19, 2048  ;;  %p1241_p4 = scmp.lt.s32.totalorder %s222_s19, %s222_s19 }
  0x51   : > { %p1234_p1 = scmp.ne.s32.totalorder %s222_s19, %s1233_s14  ;;  %p1242_p7 = scmp.lt.s32.totalorder %s1233_s14, %s1233_s14 }
  0x53   : > { %p1236_p2 = pnand %p1234_p1, %p1439_p0  ;;  %p1243_p8 = por %p1242_p7, %p1241_p4 }
  0x55   : > { %p1237_p3 = pneg %p1236_p2 }
  0x57   : > { %p1244_p11 = pnand %p1243_p8, %p1237_p3 }
  0x59   : > { %1247 = shalt.err (!%p1244_p11)
}
  0x5a   : > { %s1621_s10 = smov 8   ;;  %s1622_s15 = smov 128  }
  0x5b   : > { %1099 = dma.hbm_to_vmem [thread:$0]  (!%p1425_p12), %s1604_s3, 2048, %s222_s19, [#allocation6], %s1622_s15, %s1622_s15, %s1621_s10  }
  0x5c   : > { %p1623_p5 = scmp.ne.s32.totalorder %s1617_s9, 0 }
  0x5d   : > { %p1624_p0 = scmp.eq.s32.totalorder (!%p1623_p5), %s1389_s25, 0 }
  0x5e   : > { %250 = sbr.rel (%p1623_p5) target bundleno = 925 (0x39d), region = 44 }
  0x65   : > { %1293 = dma.done.wait (%p1624_p0), [#allocation3], 6144   ;;  %p1625_p6 = pmov %p1624_p0 }
  0x66   : > { %p1626_p9 = pmov %p1624_p0 }
  0x67   : > { %1295 = vsyncadd (%p1625_p6), [#allocation3], 4294961152 }
  0x68   : > { %1297 = dma.done.wait (%p1626_p9), [#allocation6], 4096   ;;  %p1627_p10 = pmov %p1624_p0 }
  0x69   : > { %p287_p13 = scmp.lt.s32.totalorder %s1389_s25, 1  ;;  %v1327_v0 = vmov 0   ;;  %v1328_v1 = vmov 0.0|0.0   ;;  %v301_v3 = vld [vmem:[#allocation2 + $0x8] sm:$0xff]  ;;  %v304_v4 = vld [vmem:[#allocation2 + $0x20] sm:$0xff]  ;;  %v303_v7 = vld [vmem:[#allocation2 + $0x18] sm:$0xff] }
  0x6a   : > { %1299 = vsyncadd (%p1627_p10), [#allocation6], 4294963200  ;;  %1155 = vset.pattern.permute.xlu0 %v1327_v0  ;;  %1004 = vmatprep.subr.bf16.mxu1 %v1328_v1  ;;  %v972_v5 = vpack.c.bf16 %v304_v4, %v301_v3  ;;  %v300_v6 = vld [vmem:[#allocation2] sm:$0xff]  ;;  %v302_v8 = vld [vmem:[#allocation2 + $0x10] sm:$0xff]  ;;  %v1329_v9 = vmov 0.0   ;;  %vm1330_vm0 = vmmov 0  }
  0x6b   : > { %s288_s9 = scalar_select %p287_p13, %s1389_s25, 1  ;;  %412 = vmatprep.mubr.f32.mxu0 %v1329_v9  ;;  %v974_v10 = vpack.c.bf16 %v303_v7, %v300_v6  ;;  %v305_v11 = vld [vmem:[#allocation2 + $0x28] sm:$0xff]  ;;  %v307_v12 = vld [vmem:[#allocation2 + $0x38] sm:$0xff]  ;;  %v310_v13 = vld [vmem:[#allocation2 + $0x50] sm:$0xff]  ;;  %899 = vmatprep.mubr.msk.f32.mxu1 %vm1330_vm0, %v1329_v9 }
  0x6c   : > { %973 = vmatprep.subr.bf16.mxu0 %v972_v5  ;;  %v1005_v14 = vpack.c.bf16 %v305_v11, %v302_v8  ;;  %v976_v15 = vpack.c.bf16 %v310_v13, %v307_v12  ;;  %v306_v16 = vld [vmem:[#allocation2 + $0x30] sm:$0xff]  ;;  %v309_v17 = vld [vmem:[#allocation2 + $0x48] sm:$0xff]  ;;  %v308_v18 = vld [vmem:[#allocation2 + $0x40] sm:$0xff]  ;;  %s284_s28 = sand.u32 1, %s1310_s22   ;;  %s813_s11 = sshll.u32 %s1389_s25, 7 }
  0x6d   : > { %s805_s12 = sshll.u32 %s288_s9, 3  ;;  %975 = vmatpush1.bf16.msra.mxu0 %v974_v10  ;;  %v978_v19 = vpack.c.bf16 %v309_v17, %v306_v16  ;;  %v311_v20 = vld [vmem:[#allocation2 + $0x58] sm:$0xff]  ;;  %v313_v21 = vld [vmem:[#allocation2 + $0x68] sm:$0xff]  ;;  %v316_v22 = vld [vmem:[#allocation2 + $0x80] sm:$0xff]  ;;  %s804_s29 = sshll.u32 %s284_s28, 3 }
  0x6e   : > { %s290_s16 = scalar_lea.vmem %s1601_s0, %s805_s12  ;;  %1006 = vmatpush3.bf16.msra.mxu1 %v1005_v14  ;;  %977 = vmatprep.subr.bf16.mxu0 %v976_v15  ;;  %v1008_v23 = vpack.c.bf16 %v311_v20, %v308_v18  ;;  %v980_v24 = vpack.c.bf16 %v316_v22, %v313_v21  ;;  %v312_v25 = vld [vmem:[#allocation2 + $0x60] sm:$0xff]  ;;  %v315_v26 = vld [vmem:[#allocation2 + $0x78] sm:$0xff]  ;;  %v314_v27 = vld [vmem:[#allocation2 + $0x70] sm:$0xff]  ;;  %v292_v14 = vlaneseq  ;;  %v1331_v22 = vmov 1.0   ;;  %s286_s14 = scalar_lea.vmem [#allocation8], %s804_s29 }
  0x6f   : > { %v291_v2 = vld [vmem:[%s290_s16] sm:$0xff]  ;;  %1007 = vmatprep.subr.bf16.mxu1 %v1328_v1  ;;  %v317_v28 = vld [vmem:[#allocation2 + $0x88] sm:$0xff]  ;;  %v319_v29 = vld [vmem:[#allocation2 + $0x98] sm:$0xff]  ;;  %v982_v31 = vpack.c.bf16 %v315_v26, %v312_v25  ;;  %s704_s10 = sshll.u32 %s286_s14, 4  ;;  %s1559_s13 = scalar_lea.hbm %s1607_s6, %s813_s11  ;;  %s1561_s10 = int_to_ptr.vmem [resolvable:$true] %s704_s10 }
  0x70   : > { %295 = vperm.xlu0 %1155, %v291_v2   ;;  %v322_v30 = vld [vmem:[#allocation2 + $0xb0] sm:$0xff]  ;;  %v1011_v32 = vpack.c.bf16 %v317_v28, %v314_v27  ;;  %v321_v35 = vld [vmem:[#allocation2 + $0xa8] sm:$0xff]  ;;  %v320_v36 = vld [vmem:[#allocation2 + $0xa0] sm:$0xff]  ;;  %v293_v17 = vand.u32 127, %v292_v14  ;;  %s691_s9 = scalar_lea.sflag [#allocation4], %s284_s28  ;;  %s1248_s12 = scalar_lea.vmem %s1561_s10, 128 }
  0x71   : > { %979 = vmatpush1.bf16.msra.mxu0 %v978_v19  ;;  %v984_v33 = vpack.c.bf16 %v322_v30, %v319_v29  ;;  %v318_v34 = vld [vmem:[#allocation2 + $0x90] sm:$0xff]  ;;  %v323_v37 = vld [vmem:[#allocation2 + $0xb8] sm:$0xff]  ;;  %v325_v38 = vld [vmem:[#allocation2 + $0xc8] sm:$0xff]  ;;  %p1249_p12 = scmp.ne.s32.totalorder %s1561_s10, %s1248_s12  ;;  %p1628_p1 = scmp.ne.s32.totalorder %s1615_s7, 0 }
  0x72   : > { %1009 = vmatpush3.bf16.msra.mxu1 %v1008_v23  ;;  %981 = vmatprep.subr.bf16.mxu0 %v980_v24  ;;  %v328_v39 = vld [vmem:[#allocation2 + $0xe0] sm:$0xff]  ;;  %v986_v40 = vpack.c.bf16 %v321_v35, %v318_v34  ;;  %v1014_v41 = vpack.c.bf16 %v323_v37, %v320_v36  ;;  %v327_v44 = vld [vmem:[#allocation2 + $0xd8] sm:$0xff]  ;;  %v326_v45 = vld [vmem:[#allocation2 + $0xd0] sm:$0xff]  ;;  %s1332_s25 = smov [#allocation8]  }
  0x73   : > { %1010 = vmatprep.subr.bf16.mxu1 %v1328_v1  ;;  %v988_v42 = vpack.c.bf16 %v328_v39, %v325_v38  ;;  %v324_v43 = vld [vmem:[#allocation2 + $0xc0] sm:$0xff]  ;;  %v329_v46 = vld [vmem:[#allocation2 + $0xe8] sm:$0xff]  ;;  %v331_v47 = vld [vmem:[#allocation2 + $0xf8] sm:$0xff]  ;;  %p1250_p2 = pnand %p1249_p12, %p1628_p1  ;;  %s1252_s20 = sshll.u32 %s1332_s25, 4  ;;  %s1253_s20 = int_to_ptr.vmem [resolvable:$false] %s1252_s20 }
  0x74   : > { %v334_v48 = vld [vmem:[#allocation2 + $0x110] sm:$0xff]  ;;  %v990_v49 = vpack.c.bf16 %v327_v44, %v324_v43  ;;  %v1017_v50 = vpack.c.bf16 %v329_v46, %v326_v45  ;;  %v333_v53 = vld [vmem:[#allocation2 + $0x108] sm:$0xff]  ;;  %v332_v54 = vld [vmem:[#allocation2 + $0x100] sm:$0xff]  ;;  %s1254_s30 = scalar_lea.vmem %s1253_s20, 256  ;;  %p1255_p4 = scmp.lt.s32.totalorder %s1561_s10, %s1253_s20 }
  0x75   : > { %983 = vmatpush1.bf16.msra.mxu0 %v982_v31  ;;  %v992_v51 = vpack.c.bf16 %v334_v48, %v331_v47  ;;  %v330_v52 = vld [vmem:[#allocation2 + $0xf0] sm:$0xff]  ;;  %v335_v55 = vld [vmem:[#allocation2 + $0x118] sm:$0xff]  ;;  %v337_v56 = vld [vmem:[#allocation2 + $0x128] sm:$0xff]  ;;  %p1251_p3 = pneg %p1250_p2  ;;  %p1256_p7 = scmp.lt.s32.totalorder %s1254_s30, %s1248_s12 }
  0x76   : > { %1012 = vmatpush3.bf16.msra.mxu1 %v1011_v32  ;;  %985 = vmatprep.subr.bf16.mxu0 %v984_v33  ;;  %v340_v57 = vld [vmem:[#allocation2 + $0x140] sm:$0xff]  ;;  %v994_v58 = vpack.c.bf16 %v333_v53, %v330_v52  ;;  %v1020_v59 = vpack.c.bf16 %v335_v55, %v332_v54  ;;  %v339_v62 = vld [vmem:[#allocation2 + $0x138] sm:$0xff]  ;;  %v338_v63 = vld [vmem:[#allocation2 + $0x130] sm:$0xff] }
  0x77   : > { %1013 = vmatprep.subr.bf16.mxu1 %v1328_v1  ;;  %v996_v60 = vpack.c.bf16 %v340_v57, %v337_v56  ;;  %v336_v61 = vld [vmem:[#allocation2 + $0x120] sm:$0xff]  ;;  %v341_v0 = vld [vmem:[#allocation2 + $0x148] sm:$0xff]  ;;  %v343_v2 = vld [vmem:[#allocation2 + $0x158] sm:$0xff]  ;;  %p1257_p8 = por %p1256_p7, %p1255_p4 }
  0x78   : > { %v346_v3 = vld [vmem:[#allocation2 + $0x170] sm:$0xff]  ;;  %v998_v4 = vpack.c.bf16 %v339_v62, %v336_v61  ;;  %v1023_v5 = vpack.c.bf16 %v341_v0, %v338_v63  ;;  %v345_v8 = vld [vmem:[#allocation2 + $0x168] sm:$0xff]  ;;  %v344_v10 = vld [vmem:[#allocation2 + $0x160] sm:$0xff] }
  0x79   : > { %987 = vmatpush1.bf16.msra.mxu0 %v986_v40  ;;  %v1000_v6 = vpack.c.bf16 %v346_v3, %v343_v2  ;;  %v342_v7 = vld [vmem:[#allocation2 + $0x150] sm:$0xff]  ;;  %v347_v11 = vld [vmem:[#allocation2 + $0x178] sm:$0xff]  ;;  %v489_v15 = vld [vmem:[#allocation5] sm:$0xff]  ;;  %p1258_p11 = pnand %p1257_p8, %p1251_p3 }
  0x7a   : > { %1015 = vmatpush3.bf16.msra.mxu1 %v1014_v41  ;;  %989 = vmatprep.subr.bf16.mxu0 %v988_v42  ;;  %v1002_v12 = vpack.c.bf16 %v345_v8, %v342_v7  ;;  %v1026_v13 = vpack.c.bf16 %v347_v11, %v344_v10  ;;  %v490_v16 = vld [vmem:[#allocation5 + $0x8] sm:$0xff]  ;;  %v491_v20 = vld [vmem:[#allocation5 + $0x10] sm:$0xff]  ;;  %v492_v21 = vld [vmem:[#allocation5 + $0x18] sm:$0xff] }
  0x7b   : > { %1016 = vmatprep.subr.bf16.mxu1 %v1328_v1  ;;  %v1029_v18 = vpack.c.bf16 %v490_v16, %v489_v15  ;;  %v1032_v23 = vpack.c.bf16 %v492_v21, %v491_v20  ;;  %v493_v24 = vld [vmem:[#allocation5 + $0x20] sm:$0xff]  ;;  %v494_v25 = vld [vmem:[#allocation5 + $0x28] sm:$0xff]  ;;  %v495_v27 = vld [vmem:[#allocation5 + $0x30] sm:$0xff] }
  0x7c   : > { %v1035_v26 = vpack.c.bf16 %v494_v25, %v493_v24  ;;  %v496_v28 = vld [vmem:[#allocation5 + $0x38] sm:$0xff]  ;;  %v497_v30 = vld [vmem:[#allocation5 + $0x40] sm:$0xff]  ;;  %v498_v31 = vld [vmem:[#allocation5 + $0x48] sm:$0xff] }
  0x7d   : > { %991 = vmatpush1.bf16.msra.mxu0 %v990_v49  ;;  %v1038_v29 = vpack.c.bf16 %v496_v28, %v495_v27  ;;  %v1041_v32 = vpack.c.bf16 %v498_v31, %v497_v30  ;;  %v499_v33 = vld [vmem:[#allocation5 + $0x50] sm:$0xff]  ;;  %v500_v34 = vld [vmem:[#allocation5 + $0x58] sm:$0xff]  ;;  %v501_v35 = vld [vmem:[#allocation5 + $0x60] sm:$0xff] }
  0x7e   : > { %1018 = vmatpush3.bf16.msra.mxu1 %v1017_v50  ;;  %993 = vmatprep.subr.bf16.mxu0 %v992_v51  ;;  %v502_v36 = vld [vmem:[#allocation5 + $0x68] sm:$0xff]  ;;  %v503_v38 = vld [vmem:[#allocation5 + $0x70] sm:$0xff]  ;;  %v504_v39 = vld [vmem:[#allocation5 + $0x78] sm:$0xff] }
  0x7f   : > { %1019 = vmatprep.subr.bf16.mxu1 %v1328_v1  ;;  %v1047_v37 = vpack.c.bf16 %v502_v36, %v501_v35  ;;  %v1050_v40 = vpack.c.bf16 %v504_v39, %v503_v38  ;;  %v584_v41 = vld [vmem:[#allocation7] sm:$0xff]  ;;  %v585_v42 = vld [vmem:[#allocation7 + $0x8] sm:$0xff]  ;;  %v586_v43 = vld [vmem:[#allocation7 + $0x10] sm:$0xff] }
  0x80   : > { %v1053_v44 = vpack.c.bf16 %v585_v42, %v584_v41  ;;  %v587_v45 = vld [vmem:[#allocation7 + $0x18] sm:$0xff]  ;;  %v588_v47 = vld [vmem:[#allocation7 + $0x20] sm:$0xff]  ;;  %v589_v48 = vld [vmem:[#allocation7 + $0x28] sm:$0xff] }
  0x81   : > { %995 = vmatpush1.bf16.msra.mxu0 %v994_v58  ;;  %v1056_v46 = vpack.c.bf16 %v587_v45, %v586_v43  ;;  %v1059_v49 = vpack.c.bf16 %v589_v48, %v588_v47  ;;  %v590_v50 = vld [vmem:[#allocation7 + $0x30] sm:$0xff]  ;;  %v591_v51 = vld [vmem:[#allocation7 + $0x38] sm:$0xff]  ;;  %v592_v62 = vld [vmem:[#allocation7 + $0x40] sm:$0xff] }
  0x82   : > { %1021 = vmatpush3.bf16.msra.mxu1 %v1020_v59  ;;  %997 = vmatprep.subr.bf16.mxu0 %v996_v60  ;;  %v1062_v52 = vpack.c.bf16 %v591_v51, %v590_v50  ;;  %v593_v63 = vld [vmem:[#allocation7 + $0x48] sm:$0xff]  ;;  %v594_v2 = vld [vmem:[#allocation7 + $0x50] sm:$0xff]  ;;  %v595_v3 = vld [vmem:[#allocation7 + $0x58] sm:$0xff] }
  0x83   : > { %1022 = vmatprep.subr.bf16.mxu1 %v1328_v1  ;;  %v1065_v0 = vpack.c.bf16 %v593_v63, %v592_v62  ;;  %v598_v8 = vld [vmem:[#allocation7 + $0x70] sm:$0xff]  ;;  %v599_v10 = vld [vmem:[#allocation7 + $0x78] sm:$0xff] }
  0x84   : > { %v1074_v11 = vpack.c.bf16 %v599_v10, %v598_v8 }
  0x85   : > { %999 = vmatpush1.bf16.msra.mxu0 %v998_v4  ;;  %v1068_v4 = vpack.c.bf16 %v595_v3, %v594_v2 }
  0x86   : > { %1024 = vmatpush3.bf16.msra.mxu1 %v1023_v5  ;;  %1001 = vmatprep.subr.bf16.mxu0 %v1000_v6  ;;  %v596_v5 = vld [vmem:[#allocation7 + $0x60] sm:$0xff]  ;;  %v597_v6 = vld [vmem:[#allocation7 + $0x68] sm:$0xff] }
  0x87   : > { %1025 = vmatprep.subr.bf16.mxu1 %v1328_v1  ;;  %v1071_v7 = vpack.c.bf16 %v597_v6, %v596_v5 }
  0x89   : > { %1003 = vmatpush1.bf16.msra.mxu0 %v1002_v12  ;;  %v809_v12 = vld [vmem:[%s1605_s4] ss:$0 sm:$0xff] }
  0x8a   : > { %1027 = vmatpush3.bf16.msra.mxu1 %v1026_v13  ;;  %1028 = vmatprep.subr.bf16.mxu0 %v1328_v1 }
  0x8b   : > { %1052 = vmatprep.subr.bf16.mxu1 %v1328_v1 }
  0xef   : > { %v296_v19 = vpop.permute.xlu0 %295 }
  0xf0   : > { %vm297_vm1 = vcmp.eq.s32.totalorder %v296_v19, %v293_v17 }
  0xf1   : > { %807 = vmatmul.mubr.msk.f32.vlgmr.msra.gmra.mrb[0].mxu0 %vm297_vm1, %v1331_v22  ;;  %900 = vmatmul.mubr.msk.f32.vlgmr.msra.gmra.mrb[0].mxu1 %vm297_vm1, %v1331_v22 }
  0xf2   : > { %1030 = vmatpush3.bf16.msra.mxu0 %v1029_v18  ;;  %934 = vmatprep.mubr.msk.f32.mxu0 %vm1330_vm0, %v1329_v9  ;;  %v810_v18 = vld [vmem:[%s1606_s5] ss:$0 sm:$0xff] }
  0xf3   : > { %1031 = vmatprep.subr.bf16.mxu0 %v1328_v1  ;;  %969 = vmatprep.mubr.msk.f32.mxu1 %vm1330_vm0, %v1329_v9  ;;  %v1044_v9 = vpack.c.bf16 %v500_v34, %v499_v33 }
  0xf4   : > { %1054 = vmatpush3.bf16.msra.mxu1 %v1053_v44 }
  0xf5   : > { %1055 = vmatprep.subr.bf16.mxu1 %v1328_v1 }
  0xf6   : > { %1033 = vmatpush3.bf16.msra.mxu0 %v1032_v23 }
  0xf7   : > { %1034 = vmatprep.subr.bf16.mxu0 %v1328_v1 }
  0xf8   : > { %1057 = vmatpush3.bf16.msra.mxu1 %v1056_v46 }
  0xf9   : > { %1058 = vmatprep.subr.bf16.mxu1 %v1328_v1 }
  0xfa   : > { %1036 = vmatpush3.bf16.msra.mxu0 %v1035_v26 }
  0xfb   : > { %1037 = vmatprep.subr.bf16.mxu0 %v1328_v1 }
  0xfc   : > { %1060 = vmatpush3.bf16.msra.mxu1 %v1059_v49 }
  0xfd   : > { %1061 = vmatprep.subr.bf16.mxu1 %v1328_v1 }
  0xfe   : > { %1039 = vmatpush3.bf16.msra.mxu0 %v1038_v29 }
  0xff   : > { %1040 = vmatprep.subr.bf16.mxu0 %v1328_v1 }
 0x100   : > { %1063 = vmatpush3.bf16.msra.mxu1 %v1062_v52 }
 0x101   : > { %1064 = vmatprep.subr.bf16.mxu1 %v1328_v1 }
 0x102   : > { %1042 = vmatpush3.bf16.msra.mxu0 %v1041_v32 }
 0x103   : > { %1043 = vmatprep.subr.bf16.mxu0 %v1328_v1 }
 0x104   : > { %1066 = vmatpush3.bf16.msra.mxu1 %v1065_v0 }
 0x105   : > { %1067 = vmatprep.subr.bf16.mxu1 %v1328_v1 }
 0x106   : > { %1045 = vmatpush3.bf16.msra.mxu0 %v1044_v9 }
 0x107   : > { %1046 = vmatprep.subr.bf16.mxu0 %v1328_v1 }
 0x108   : > { %1069 = vmatpush3.bf16.msra.mxu1 %v1068_v4 }
 0x109   : > { %1070 = vmatprep.subr.bf16.mxu1 %v1328_v1 }
 0x10a   : > { %1048 = vmatpush3.bf16.msra.mxu0 %v1047_v37 }
 0x10b   : > { %1049 = vmatprep.subr.bf16.mxu0 %v1328_v1 }
 0x10c   : > { %1072 = vmatpush3.bf16.msra.mxu1 %v1071_v7 }
 0x10d   : > { %1073 = vmatprep.subr.bf16.mxu1 %v1328_v1 }
 0x10e   : > { %1051 = vmatpush3.bf16.msra.mxu0 %v1050_v40 }
 0x110   : > { %1075 = vmatpush3.bf16.msra.mxu1 %v1074_v11 }
 0x1c4   : > { %v414_v53 = vpop.f32.mrb[0].mxu0  ;;  %v485_v54 = vpop.f32.mrb[0].mxu1 }
 0x1c5   : > { %v811_v55 = vmul.f32 -1.442695, %v485_v54  ;;  %v416_v56 = vpop.f32.mrb[1].mxu0  ;;  %v901_v57 = vpop.f32.mrb[1].mxu1  ;;  %935 = vmatmul.mubr.f32.vlgmr.msra.gmra.mrb[2].mxu0 %v414_v53 }
 0x1c7   : > { %1156 = vpow2.f32 %v811_v55 }
 0x1d1   : > { %v1157_v58 = vpop.eup %1156 }
 0x1d2   : > { %v682_v59 = vadd.f32 1.0, %v1157_v58 }
 0x1d4   : > { %1158 = vrcp.f32 %v682_v59 }
 0x1de   : > { %v1159_v60 = vpop.eup %1158 }
 0x1df   : > { %v687_v61 = vmul.f32 %v1159_v60, %v416_v56  ;;  %v685_v23 = vsub.f32 1.0, %v1159_v60 }
 0x298   : > { %v578_v13 = vpop.f32.mrb[2].mxu0 }
 0x299   : > { %v579_v14 = vadd.f32 %v809_v12, %v578_v13  ;;  %v936_v15 = vpop.f32.mrb[3].mxu0 }
 0x29b   : > { %1160 = vtanh.f32 %v579_v14 }
 0x2a5   : > { %v1161_v16 = vpop.eup %1160 }
 0x2a6   : > { %v583_v17 = vadd.f32 %v1161_v16, %v414_v53 }
 0x2a8   : > { %970 = vmatmul.mubr.f32.vlgmr.msra.gmra.mrb[2].mxu1 %v583_v17 }
 0x37b   : > { %v673_v19 = vpop.f32.mrb[2].mxu1 }
 0x37c   : > { %v674_v20 = vadd.f32 %v810_v18, %v673_v19  ;;  %v971_v1 = vpop.f32.mrb[3].mxu1 }
 0x37e   : > { %1162 = vtanh.f32 %v674_v20 }
 0x388   : > { %v1163_v21 = vpop.eup %1162 }
 0x389   : > { %v678_v22 = vadd.f32 %v1163_v21, %v583_v17 }
 0x38b   : > { %v686_v24 = vmul.f32 %v685_v23, %v678_v22 }
 0x38d   : > { %v688_v25 = vadd.f32 %v687_v61, %v686_v24 }
 0x38f   : > { %689 = vst [vmem:[%s286_s14] sm:$0xff] %v688_v25 }
 0x390   : > { %1261 = shalt.err (!%p1258_p11)
}
 0x391   : > { %s1262_s16 = scalar_lea.hbm %s1559_s13, 128  ;;  %s1266_s19 = scalar_lea.hbm %s1607_s6, 256 }
 0x392   : > { %p1263_p5 = scmp.ne.s32.totalorder %s1559_s13, %s1262_s16  ;;  %p1267_p9 = scmp.lt.u32.totalorder %s1559_s13, %s1607_s6 }
 0x393   : > { %p1268_p10 = scmp.lt.u32.totalorder %s1266_s19, %s1262_s16  ;;  %p1270_p12 = scmp.lt.u32.totalorder %s1262_s16, %s1559_s13 }
 0x394   : > { %p1264_p0 = pnand %p1263_p5, %p1628_p1 }
 0x395   : > { %p1269_p13 = por %p1268_p10, %p1267_p9 }
 0x396   : > { %p1265_p6 = pneg %p1264_p0 }
 0x397   : > { %p1271_p2 = por %p1270_p12, %p1269_p13 }
 0x399   : > { %p1272_p3 = pnand %p1271_p2, %p1265_p6 }
 0x39b   : > { %1275 = shalt.err (!%p1272_p3)
}
 0x39c   : > { %1088 = dma.vmem_to_hbm [thread:$0]  (%p1628_p1), %s1561_s10, 128, %s1559_s13, %s691_s9  }
 0x39d PF: > { %p1110_p4 = scmp.ge.s32.totalorder %s1318_s24, 2  ;;  %s716_s29 = sand.u32 1, %s1306_s21  }
 0x39e   : > { %p1629_p7 = scmp.ne.s32.totalorder %s1616_s8, 0  ;;  %s717_s11 = scalar_lea.sflag [#allocation4], %s716_s29 }
 0x3a0   : > { %p1101_p8 = pnand %p1110_p4, %p1629_p7 }
 0x3a2   : > { %1301 = dma.done.wait (!%p1101_p8), %s717_s11, 128  }
 0x3a3   : > { %1303 = vsyncadd (!%p1101_p8), %s717_s11, 4294967168  ;;  %s1630_s14 = sld [smem:[#allocation12_spill]]  ;;  %p18_p11 = scmp.ge.s32.totalorder %s1393_s27, 4  }
 0x3a4   : > { %s1631_s21 = smov %s1310_s22  ;;  %s1632_s22 = smov %s1314_s23 }
 0x3a5   : > { %s1634_s24 = smov %s1393_s27  ;;  %20 = sbr.rel (!%p18_p11) target bundleno = 7 (0x7), region = 92 }
 0x3a9   : > { %s1633_s23 = smov %s1630_s14 }
 0x3ac   :  { %722 = vsyncpa [#allocation3], 1 }
 0x3ad   :  { %724 = vsyncpa [#allocation3 + $0x1], 1 }
 0x3ae   :  { %725 = vsyncpa [#allocation6], 1 }
 0x3af   :  { %726 = vsyncpa [#allocation4], 1 }
 0x3b0   :  { %728 = vsyncpa [#allocation4 + $0x1], 1 }

// kernel: tpu_custom_call.1
= control target key start
LH: loop header
LB: loop body
LE: loop exit
PB: predicated region body
PF: predicated region fallthrough
CT: control target
= control target key end

     0   :  { %s1601_s0 = inlined_call_operand.vmem [shape: s32[16,1], index: 0, kind: input, shape index: {}]   ;;  %s1602_s1 = inlined_call_operand.hbm [shape: f32[128,384], index: 1, kind: input, shape index: {}]   ;;  %s1603_s2 = inlined_call_operand.hbm [shape: f32[128,128], index: 2, kind: input, shape index: {}]   ;;  %s1604_s3 = inlined_call_operand.hbm [shape: f32[128,128], index: 3, kind: input, shape index: {}]   ;;  %s1605_s4 = inlined_call_operand.vmem [shape: f32[1,128], index: 4, kind: input, shape index: {}]   ;;  %s1606_s5 = inlined_call_operand.vmem [shape: f32[1,128], index: 5, kind: input, shape index: {}]   ;;  %s1607_s6 = inlined_call_operand.hbm [shape: f32[16,128], index: 6, kind: output, shape index: {}]  }
   0x1   :  { %1613 = sst [smem:[#allocation13_spill]] %s1603_s2 }
   0x2   :  { %11 = vsyncpa [#allocation3], 0 }
   0x3   :  { %12 = vsyncpa [#allocation6], 0 }
   0x4   :  { %13 = vsyncpa [#allocation4], 0 }
   0x5   :  { %15 = vsyncpa [#allocation4 + $0x1], 0  ;;  %s1368_s21 = smov 0   ;;  %s1370_s22 = smov 0  }
   0x6   :  { %s1372_s23 = smov 0   ;;  %s1374_s24 = smov 0  }
   0x7 LB: > { %s1389_s25 = sadd.s32 4294967295, %s1318_s24   ;;  %s794_s26 = sadd.s32 4294967294, %s1318_s24   ;;  %s1318_s24 = sphi %s1374_s24, %s1634_s24   ;;  %s1314_s23 = sphi %s1372_s23, %s1633_s23   ;;  %s1310_s22 = sphi %s1370_s22, %s1632_s22   ;;  %s1306_s21 = sphi %s1368_s21, %s1631_s21  }
   0x8   : > { %s1393_s27 = sadd.s32 1, %s1318_s24   ;;  %s159_s28 = sadd.s32 1, %s1314_s23 }
   0x9   : > { %s156_s29 = ssub.s32 %s1318_s24, %s1393_s27  ;;  %p169_p0 = scmp.ne.s32.totalorder %s1314_s23, %s1310_s22 }
   0xa   : > { %p157_p1 = scmp.eq.s32.totalorder %s156_s29, 0  ;;  %p170_p2 = scmp.eq.s32.totalorder %s1389_s25, 1 }
   0xb   : > { %p175_p3 = scmp.ne.s32.totalorder %s1310_s22, %s1306_s21  ;;  %p176_p4 = scmp.eq.s32.totalorder %s794_s26, 1 }
   0xc   : > { %s1404_s30 = scalar_select %p157_p1, %s1314_s23, %s159_s28  }
   0xd   : > { %p1406_p5 = por %p170_p2, %p169_p0  ;;  %p1410_p6 = por %p176_p4, %p175_p3 }
   0xe   : > { %1614 = sst [smem:[#allocation12_spill]] %s1404_s30  ;;  %p795_p7 = scmp.ge.s32.totalorder %s1318_s24, 1 }
   0xf   : > { %s1615_s7 = scalar_select %p1406_p5, 1, 0 }
  0x10   : > { %s1616_s8 = scalar_select %p1410_p6, 1, 0 }
  0x11   : > { %p183_p8 = scmp.lt.s32.totalorder %s1318_s24, 3  ;;  %p1608_p9 = scmp.eq.s32.totalorder %s1389_s25, 0 }
  0x12   : > { %s1320_s10 = smov [#allocation5]   ;;  %s1321_s13 = smov [#allocation2]  }
  0x13   : > { %p1417_p10 = pnand %p795_p7, %p183_p8  ;;  %s208_s11 = sshll.u32 %s1320_s10, 4  ;;  %s209_s11 = int_to_ptr.vmem [resolvable:$true] %s208_s11 }
  0x14   : > { %s195_s14 = sshll.u32 %s1321_s13, 4  ;;  %s1619_s2 = sld [smem:[#allocation13_spill]]  ;;  %s1429_s14 = int_to_ptr.vmem [resolvable:$true] %s195_s14 }
  0x15   : > { %s1617_s9 = scalar_select %p1417_p10, 1, 0 }
  0x16   : > { %p1090_p11 = pneg %p1417_p10 }
  0x18   : > { %p1425_p12 = pnand %p1608_p9, %p1090_p11 }
  0x1a   : > { %s1164_s17 = scalar_lea.hbm %s1619_s2, 2048  ;;  %p1439_p0 = pneg %p1425_p12 }
  0x1b   : > { %p1165_p13 = scmp.ne.s32.totalorder %s1619_s2, %s1164_s17  ;;  %p1171_p3 = scmp.lt.u32.totalorder %s1164_s17, %s1619_s2 }
  0x1d   : > { %p1167_p1 = pnand %p1439_p0, %p1165_p13 }
  0x1f   : > { %p1168_p2 = pneg %p1167_p1 }
  0x21   : > { %p1173_p4 = pnand %p1171_p3, %p1168_p2 }
  0x23   : > { %1176 = shalt.err (!%p1173_p4)
}
  0x24   : > { %s1177_s29 = scalar_lea.vmem %s209_s11, 2048  ;;  %p1185_p9 = scmp.lt.s32.totalorder %s209_s11, %s209_s11 }
  0x25   : > { %p1178_p7 = scmp.ne.s32.totalorder %s209_s11, %s1177_s29  ;;  %p1186_p6 = scmp.lt.s32.totalorder %s1177_s29, %s1177_s29 }
  0x27   : > { %p1180_p8 = pnand %p1178_p7, %p1439_p0  ;;  %p1187_p5 = por %p1186_p6, %p1185_p9 }
  0x29   : > { %p1181_p11 = pneg %p1180_p8 }
  0x2b   : > { %p1188_p10 = pnand %p1187_p5, %p1181_p11 }
  0x2d   : > { %1191 = shalt.err (!%p1188_p10)
}
  0x2e   : > { %s1611_s10 = smov 128   ;;  %s1612_s13 = smov 8  }
  0x2f   : > { %1096 = dma.hbm_to_vmem [thread:$0]  (!%p1425_p12), %s1619_s2, 2048, %s209_s11, [#allocation6], %s1611_s10, %s1611_s10, %s1612_s13  }
  0x30   : > { %s1192_s19 = scalar_lea.hbm %s1602_s1, 6144 }
  0x31   : > { %p1193_p5 = scmp.ne.s32.totalorder %s1602_s1, %s1192_s19  ;;  %p1199_p10 = scmp.lt.u32.totalorder %s1192_s19, %s1602_s1 }
  0x33   : > { %p1195_p6 = pnand %p1193_p5, %p1439_p0 }
  0x35   : > { %p1196_p9 = pneg %p1195_p6 }
  0x37   : > { %p1201_p13 = pnand %p1199_p10, %p1196_p9 }
  0x39   : > { %1204 = shalt.err (!%p1201_p13)
}
  0x3a   : > { %s1205_s11 = scalar_lea.vmem %s1429_s14, 6144  ;;  %p1213_p4 = scmp.lt.s32.totalorder %s1429_s14, %s1429_s14 }
  0x3b   : > { %p1206_p1 = scmp.ne.s32.totalorder %s1429_s14, %s1205_s11  ;;  %p1214_p7 = scmp.lt.s32.totalorder %s1205_s11, %s1205_s11 }
  0x3d   : > { %p1208_p2 = pnand %p1206_p1, %p1439_p0  ;;  %p1215_p8 = por %p1214_p7, %p1213_p4 }
  0x3f   : > { %p1209_p3 = pneg %p1208_p2 }
  0x41   : > { %p1216_p11 = pnand %p1215_p8, %p1209_p3 }
  0x43   : > { %1219 = shalt.err (!%p1216_p11)
}
  0x44   : > { %s1324_s15 = smov 384   ;;  %s1325_s30 = smov 24  }
  0x45   : > { %1093 = dma.hbm_to_vmem [thread:$0]  (!%p1425_p12), %s1602_s1, 6144, %s1429_s14, [#allocation3], %s1324_s15, %s1324_s15, %s1325_s30  }
  0x46   : > { %s1326_s18 = smov [#allocation7]   ;;  %s1220_s29 = scalar_lea.hbm %s1604_s3, 2048 }
  0x47   : > { %s221_s19 = sshll.u32 %s1326_s18, 4  ;;  %p1221_p5 = scmp.ne.s32.totalorder %s1604_s3, %s1220_s29  ;;  %s222_s19 = int_to_ptr.vmem [resolvable:$true] %s221_s19 }
  0x48   : > { %p1227_p10 = scmp.lt.u32.totalorder %s1220_s29, %s1604_s3 }
  0x49   : > { %p1223_p6 = pnand %p1221_p5, %p1439_p0 }
  0x4b   : > { %p1224_p9 = pneg %p1223_p6 }
  0x4d   : > { %p1229_p13 = pnand %p1227_p10, %p1224_p9 }
  0x4f   : > { %1232 = shalt.err (!%p1229_p13)
}
  0x50   : > { %s1233_s14 = scalar_lea.vmem %s222_s19, 2048  ;;  %p1241_p4 = scmp.lt.s32.totalorder %s222_s19, %s222_s19 }
  0x51   : > { %p1234_p1 = scmp.ne.s32.totalorder %s222_s19, %s1233_s14  ;;  %p1242_p7 = scmp.lt.s32.totalorder %s1233_s14, %s1233_s14 }
  0x53   : > { %p1236_p2 = pnand %p1234_p1, %p1439_p0  ;;  %p1243_p8 = por %p1242_p7, %p1241_p4 }
  0x55   : > { %p1237_p3 = pneg %p1236_p2 }
  0x57   : > { %p1244_p11 = pnand %p1243_p8, %p1237_p3 }
  0x59   : > { %1247 = shalt.err (!%p1244_p11)
}
  0x5a   : > { %s1621_s10 = smov 8   ;;  %s1622_s15 = smov 128  }
  0x5b   : > { %1099 = dma.hbm_to_vmem [thread:$0]  (!%p1425_p12), %s1604_s3, 2048, %s222_s19, [#allocation6], %s1622_s15, %s1622_s15, %s1621_s10  }
  0x5c   : > { %p1623_p5 = scmp.ne.s32.totalorder %s1617_s9, 0 }
  0x5d   : > { %p1624_p0 = scmp.eq.s32.totalorder (!%p1623_p5), %s1389_s25, 0 }
  0x5e   : > { %250 = sbr.rel (%p1623_p5) target bundleno = 925 (0x39d), region = 44 }
  0x65   : > { %1293 = dma.done.wait (%p1624_p0), [#allocation3], 6144   ;;  %p1625_p6 = pmov %p1624_p0 }
  0x66   : > { %p1626_p9 = pmov %p1624_p0 }
  0x67   : > { %1295 = vsyncadd (%p1625_p6), [#allocation3], 4294961152 }
  0x68   : > { %1297 = dma.done.wait (%p1626_p9), [#allocation6], 4096   ;;  %p1627_p10 = pmov %p1624_p0 }
  0x69   : > { %p287_p13 = scmp.lt.s32.totalorder %s1389_s25, 1  ;;  %v1327_v0 = vmov 0   ;;  %v1328_v1 = vmov 0.0|0.0   ;;  %v301_v3 = vld [vmem:[#allocation2 + $0x8] sm:$0xff]  ;;  %v304_v4 = vld [vmem:[#allocation2 + $0x20] sm:$0xff]  ;;  %v303_v7 = vld [vmem:[#allocation2 + $0x18] sm:$0xff] }
  0x6a   : > { %1299 = vsyncadd (%p1627_p10), [#allocation6], 4294963200  ;;  %1155 = vset.pattern.permute.xlu0 %v1327_v0  ;;  %1004 = vmatprep.subr.bf16.mxu1 %v1328_v1  ;;  %v972_v5 = vpack.c.bf16 %v304_v4, %v301_v3  ;;  %v300_v6 = vld [vmem:[#allocation2] sm:$0xff]  ;;  %v302_v8 = vld [vmem:[#allocation2 + $0x10] sm:$0xff]  ;;  %v1329_v9 = vmov 0.0   ;;  %vm1330_vm0 = vmmov 0  }
  0x6b   : > { %s288_s9 = scalar_select %p287_p13, %s1389_s25, 1  ;;  %412 = vmatprep.mubr.f32.mxu0 %v1329_v9  ;;  %v974_v10 = vpack.c.bf16 %v303_v7, %v300_v6  ;;  %v305_v11 = vld [vmem:[#allocation2 + $0x28] sm:$0xff]  ;;  %v307_v12 = vld [vmem:[#allocation2 + $0x38] sm:$0xff]  ;;  %v310_v13 = vld [vmem:[#allocation2 + $0x50] sm:$0xff]  ;;  %899 = vmatprep.mubr.msk.f32.mxu1 %vm1330_vm0, %v1329_v9 }
  0x6c   : > { %973 = vmatprep.subr.bf16.mxu0 %v972_v5  ;;  %v1005_v14 = vpack.c.bf16 %v305_v11, %v302_v8  ;;  %v976_v15 = vpack.c.bf16 %v310_v13, %v307_v12  ;;  %v306_v16 = vld [vmem:[#allocation2 + $0x30] sm:$0xff]  ;;  %v309_v17 = vld [vmem:[#allocation2 + $0x48] sm:$0xff]  ;;  %v308_v18 = vld [vmem:[#allocation2 + $0x40] sm:$0xff]  ;;  %s284_s28 = sand.u32 1, %s1310_s22   ;;  %s813_s11 = sshll.u32 %s1389_s25, 7 }
  0x6d   : > { %s805_s12 = sshll.u32 %s288_s9, 3  ;;  %975 = vmatpush1.bf16.msra.mxu0 %v974_v10  ;;  %v978_v19 = vpack.c.bf16 %v309_v17, %v306_v16  ;;  %v311_v20 = vld [vmem:[#allocation2 + $0x58] sm:$0xff]  ;;  %v313_v21 = vld [vmem:[#allocation2 + $0x68] sm:$0xff]  ;;  %v316_v22 = vld [vmem:[#allocation2 + $0x80] sm:$0xff]  ;;  %s804_s29 = sshll.u32 %s284_s28, 3 }
  0x6e   : > { %s290_s16 = scalar_lea.vmem %s1601_s0, %s805_s12  ;;  %1006 = vmatpush3.bf16.msra.mxu1 %v1005_v14  ;;  %977 = vmatprep.subr.bf16.mxu0 %v976_v15  ;;  %v1008_v23 = vpack.c.bf16 %v311_v20, %v308_v18  ;;  %v980_v24 = vpack.c.bf16 %v316_v22, %v313_v21  ;;  %v312_v25 = vld [vmem:[#allocation2 + $0x60] sm:$0xff]  ;;  %v315_v26 = vld [vmem:[#allocation2 + $0x78] sm:$0xff]  ;;  %v314_v27 = vld [vmem:[#allocation2 + $0x70] sm:$0xff]  ;;  %v292_v14 = vlaneseq  ;;  %v1331_v22 = vmov 1.0   ;;  %s286_s14 = scalar_lea.vmem [#allocation8], %s804_s29 }
  0x6f   : > { %v291_v2 = vld [vmem:[%s290_s16] sm:$0xff]  ;;  %1007 = vmatprep.subr.bf16.mxu1 %v1328_v1  ;;  %v317_v28 = vld [vmem:[#allocation2 + $0x88] sm:$0xff]  ;;  %v319_v29 = vld [vmem:[#allocation2 + $0x98] sm:$0xff]  ;;  %v982_v31 = vpack.c.bf16 %v315_v26, %v312_v25  ;;  %s704_s10 = sshll.u32 %s286_s14, 4  ;;  %s1559_s13 = scalar_lea.hbm %s1607_s6, %s813_s11  ;;  %s1561_s10 = int_to_ptr.vmem [resolvable:$true] %s704_s10 }
  0x70   : > { %295 = vperm.xlu0 %1155, %v291_v2   ;;  %v322_v30 = vld [vmem:[#allocation2 + $0xb0] sm:$0xff]  ;;  %v1011_v32 = vpack.c.bf16 %v317_v28, %v314_v27  ;;  %v321_v35 = vld [vmem:[#allocation2 + $0xa8] sm:$0xff]  ;;  %v320_v36 = vld [vmem:[#allocation2 + $0xa0] sm:$0xff]  ;;  %v293_v17 = vand.u32 127, %v292_v14  ;;  %s691_s9 = scalar_lea.sflag [#allocation4], %s284_s28  ;;  %s1248_s12 = scalar_lea.vmem %s1561_s10, 128 }
  0x71   : > { %979 = vmatpush1.bf16.msra.mxu0 %v978_v19  ;;  %v984_v33 = vpack.c.bf16 %v322_v30, %v319_v29  ;;  %v318_v34 = vld [vmem:[#allocation2 + $0x90] sm:$0xff]  ;;  %v323_v37 = vld [vmem:[#allocation2 + $0xb8] sm:$0xff]  ;;  %v325_v38 = vld [vmem:[#allocation2 + $0xc8] sm:$0xff]  ;;  %p1249_p12 = scmp.ne.s32.totalorder %s1561_s10, %s1248_s12  ;;  %p1628_p1 = scmp.ne.s32.totalorder %s1615_s7, 0 }
  0x72   : > { %1009 = vmatpush3.bf16.msra.mxu1 %v1008_v23  ;;  %981 = vmatprep.subr.bf16.mxu0 %v980_v24  ;;  %v328_v39 = vld [vmem:[#allocation2 + $0xe0] sm:$0xff]  ;;  %v986_v40 = vpack.c.bf16 %v321_v35, %v318_v34  ;;  %v1014_v41 = vpack.c.bf16 %v323_v37, %v320_v36  ;;  %v327_v44 = vld [vmem:[#allocation2 + $0xd8] sm:$0xff]  ;;  %v326_v45 = vld [vmem:[#allocation2 + $0xd0] sm:$0xff]  ;;  %s1332_s25 = smov [#allocation8]  }
  0x73   : > { %1010 = vmatprep.subr.bf16.mxu1 %v1328_v1  ;;  %v988_v42 = vpack.c.bf16 %v328_v39, %v325_v38  ;;  %v324_v43 = vld [vmem:[#allocation2 + $0xc0] sm:$0xff]  ;;  %v329_v46 = vld [vmem:[#allocation2 + $0xe8] sm:$0xff]  ;;  %v331_v47 = vld [vmem:[#allocation2 + $0xf8] sm:$0xff]  ;;  %p1250_p2 = pnand %p1249_p12, %p1628_p1  ;;  %s1252_s20 = sshll.u32 %s1332_s25, 4  ;;  %s1253_s20 = int_to_ptr.vmem [resolvable:$false] %s1252_s20 }
  0x74   : > { %v334_v48 = vld [vmem:[#allocation2 + $0x110] sm:$0xff]  ;;  %v990_v49 = vpack.c.bf16 %v327_v44, %v324_v43  ;;  %v1017_v50 = vpack.c.bf16 %v329_v46, %v326_v45  ;;  %v333_v53 = vld [vmem:[#allocation2 + $0x108] sm:$0xff]  ;;  %v332_v54 = vld [vmem:[#allocation2 + $0x100] sm:$0xff]  ;;  %s1254_s30 = scalar_lea.vmem %s1253_s20, 256  ;;  %p1255_p4 = scmp.lt.s32.totalorder %s1561_s10, %s1253_s20 }
  0x75   : > { %983 = vmatpush1.bf16.msra.mxu0 %v982_v31  ;;  %v992_v51 = vpack.c.bf16 %v334_v48, %v331_v47  ;;  %v330_v52 = vld [vmem:[#allocation2 + $0xf0] sm:$0xff]  ;;  %v335_v55 = vld [vmem:[#allocation2 + $0x118] sm:$0xff]  ;;  %v337_v56 = vld [vmem:[#allocation2 + $0x128] sm:$0xff]  ;;  %p1251_p3 = pneg %p1250_p2  ;;  %p1256_p7 = scmp.lt.s32.totalorder %s1254_s30, %s1248_s12 }
  0x76   : > { %1012 = vmatpush3.bf16.msra.mxu1 %v1011_v32  ;;  %985 = vmatprep.subr.bf16.mxu0 %v984_v33  ;;  %v340_v57 = vld [vmem:[#allocation2 + $0x140] sm:$0xff]  ;;  %v994_v58 = vpack.c.bf16 %v333_v53, %v330_v52  ;;  %v1020_v59 = vpack.c.bf16 %v335_v55, %v332_v54  ;;  %v339_v62 = vld [vmem:[#allocation2 + $0x138] sm:$0xff]  ;;  %v338_v63 = vld [vmem:[#allocation2 + $0x130] sm:$0xff] }
  0x77   : > { %1013 = vmatprep.subr.bf16.mxu1 %v1328_v1  ;;  %v996_v60 = vpack.c.bf16 %v340_v57, %v337_v56  ;;  %v336_v61 = vld [vmem:[#allocation2 + $0x120] sm:$0xff]  ;;  %v341_v0 = vld [vmem:[#allocation2 + $0x148] sm:$0xff]  ;;  %v343_v2 = vld [vmem:[#allocation2 + $0x158] sm:$0xff]  ;;  %p1257_p8 = por %p1256_p7, %p1255_p4 }
  0x78   : > { %v346_v3 = vld [vmem:[#allocation2 + $0x170] sm:$0xff]  ;;  %v998_v4 = vpack.c.bf16 %v339_v62, %v336_v61  ;;  %v1023_v5 = vpack.c.bf16 %v341_v0, %v338_v63  ;;  %v345_v8 = vld [vmem:[#allocation2 + $0x168] sm:$0xff]  ;;  %v344_v10 = vld [vmem:[#allocation2 + $0x160] sm:$0xff] }
  0x79   : > { %987 = vmatpush1.bf16.msra.mxu0 %v986_v40  ;;  %v1000_v6 = vpack.c.bf16 %v346_v3, %v343_v2  ;;  %v342_v7 = vld [vmem:[#allocation2 + $0x150] sm:$0xff]  ;;  %v347_v11 = vld [vmem:[#allocation2 + $0x178] sm:$0xff]  ;;  %v489_v15 = vld [vmem:[#allocation5] sm:$0xff]  ;;  %p1258_p11 = pnand %p1257_p8, %p1251_p3 }
  0x7a   : > { %1015 = vmatpush3.bf16.msra.mxu1 %v1014_v41  ;;  %989 = vmatprep.subr.bf16.mxu0 %v988_v42  ;;  %v1002_v12 = vpack.c.bf16 %v345_v8, %v342_v7  ;;  %v1026_v13 = vpack.c.bf16 %v347_v11, %v344_v10  ;;  %v490_v16 = vld [vmem:[#allocation5 + $0x8] sm:$0xff]  ;;  %v491_v20 = vld [vmem:[#allocation5 + $0x10] sm:$0xff]  ;;  %v492_v21 = vld [vmem:[#allocation5 + $0x18] sm:$0xff] }
  0x7b   : > { %1016 = vmatprep.subr.bf16.mxu1 %v1328_v1  ;;  %v1029_v18 = vpack.c.bf16 %v490_v16, %v489_v15  ;;  %v1032_v23 = vpack.c.bf16 %v492_v21, %v491_v20  ;;  %v493_v24 = vld [vmem:[#allocation5 + $0x20] sm:$0xff]  ;;  %v494_v25 = vld [vmem:[#allocation5 + $0x28] sm:$0xff]  ;;  %v495_v27 = vld [vmem:[#allocation5 + $0x30] sm:$0xff] }
  0x7c   : > { %v1035_v26 = vpack.c.bf16 %v494_v25, %v493_v24  ;;  %v496_v28 = vld [vmem:[#allocation5 + $0x38] sm:$0xff]  ;;  %v497_v30 = vld [vmem:[#allocation5 + $0x40] sm:$0xff]  ;;  %v498_v31 = vld [vmem:[#allocation5 + $0x48] sm:$0xff] }
  0x7d   : > { %991 = vmatpush1.bf16.msra.mxu0 %v990_v49  ;;  %v1038_v29 = vpack.c.bf16 %v496_v28, %v495_v27  ;;  %v1041_v32 = vpack.c.bf16 %v498_v31, %v497_v30  ;;  %v499_v33 = vld [vmem:[#allocation5 + $0x50] sm:$0xff]  ;;  %v500_v34 = vld [vmem:[#allocation5 + $0x58] sm:$0xff]  ;;  %v501_v35 = vld [vmem:[#allocation5 + $0x60] sm:$0xff] }
  0x7e   : > { %1018 = vmatpush3.bf16.msra.mxu1 %v1017_v50  ;;  %993 = vmatprep.subr.bf16.mxu0 %v992_v51  ;;  %v502_v36 = vld [vmem:[#allocation5 + $0x68] sm:$0xff]  ;;  %v503_v38 = vld [vmem:[#allocation5 + $0x70] sm:$0xff]  ;;  %v504_v39 = vld [vmem:[#allocation5 + $0x78] sm:$0xff] }
  0x7f   : > { %1019 = vmatprep.subr.bf16.mxu1 %v1328_v1  ;;  %v1047_v37 = vpack.c.bf16 %v502_v36, %v501_v35  ;;  %v1050_v40 = vpack.c.bf16 %v504_v39, %v503_v38  ;;  %v584_v41 = vld [vmem:[#allocation7] sm:$0xff]  ;;  %v585_v42 = vld [vmem:[#allocation7 + $0x8] sm:$0xff]  ;;  %v586_v43 = vld [vmem:[#allocation7 + $0x10] sm:$0xff] }
  0x80   : > { %v1053_v44 = vpack.c.bf16 %v585_v42, %v584_v41  ;;  %v587_v45 = vld [vmem:[#allocation7 + $0x18] sm:$0xff]  ;;  %v588_v47 = vld [vmem:[#allocation7 + $0x20] sm:$0xff]  ;;  %v589_v48 = vld [vmem:[#allocation7 + $0x28] sm:$0xff] }
  0x81   : > { %995 = vmatpush1.bf16.msra.mxu0 %v994_v58  ;;  %v1056_v46 = vpack.c.bf16 %v587_v45, %v586_v43  ;;  %v1059_v49 = vpack.c.bf16 %v589_v48, %v588_v47  ;;  %v590_v50 = vld [vmem:[#allocation7 + $0x30] sm:$0xff]  ;;  %v591_v51 = vld [vmem:[#allocation7 + $0x38] sm:$0xff]  ;;  %v592_v62 = vld [vmem:[#allocation7 + $0x40] sm:$0xff] }
  0x82   : > { %1021 = vmatpush3.bf16.msra.mxu1 %v1020_v59  ;;  %997 = vmatprep.subr.bf16.mxu0 %v996_v60  ;;  %v1062_v52 = vpack.c.bf16 %v591_v51, %v590_v50  ;;  %v593_v63 = vld [vmem:[#allocation7 + $0x48] sm:$0xff]  ;;  %v594_v2 = vld [vmem:[#allocation7 + $0x50] sm:$0xff]  ;;  %v595_v3 = vld [vmem:[#allocation7 + $0x58] sm:$0xff] }
  0x83   : > { %1022 = vmatprep.subr.bf16.mxu1 %v1328_v1  ;;  %v1065_v0 = vpack.c.bf16 %v593_v63, %v592_v62  ;;  %v598_v8 = vld [vmem:[#allocation7 + $0x70] sm:$0xff]  ;;  %v599_v10 = vld [vmem:[#allocation7 + $0x78] sm:$0xff] }
  0x84   : > { %v1074_v11 = vpack.c.bf16 %v599_v10, %v598_v8 }
  0x85   : > { %999 = vmatpush1.bf16.msra.mxu0 %v998_v4  ;;  %v1068_v4 = vpack.c.bf16 %v595_v3, %v594_v2 }
  0x86   : > { %1024 = vmatpush3.bf16.msra.mxu1 %v1023_v5  ;;  %1001 = vmatprep.subr.bf16.mxu0 %v1000_v6  ;;  %v596_v5 = vld [vmem:[#allocation7 + $0x60] sm:$0xff]  ;;  %v597_v6 = vld [vmem:[#allocation7 + $0x68] sm:$0xff] }
  0x87   : > { %1025 = vmatprep.subr.bf16.mxu1 %v1328_v1  ;;  %v1071_v7 = vpack.c.bf16 %v597_v6, %v596_v5 }
  0x89   : > { %1003 = vmatpush1.bf16.msra.mxu0 %v1002_v12  ;;  %v809_v12 = vld [vmem:[%s1605_s4] ss:$0 sm:$0xff] }
  0x8a   : > { %1027 = vmatpush3.bf16.msra.mxu1 %v1026_v13  ;;  %1028 = vmatprep.subr.bf16.mxu0 %v1328_v1 }
  0x8b   : > { %1052 = vmatprep.subr.bf16.mxu1 %v1328_v1 }
  0xef   : > { %v296_v19 = vpop.permute.xlu0 %295 }
  0xf0   : > { %vm297_vm1 = vcmp.eq.s32.totalorder %v296_v19, %v293_v17 }
  0xf1   : > { %807 = vmatmul.mubr.msk.f32.vlgmr.msra.gmra.mrb[0].mxu0 %vm297_vm1, %v1331_v22  ;;  %900 = vmatmul.mubr.msk.f32.vlgmr.msra.gmra.mrb[0].mxu1 %vm297_vm1, %v1331_v22 }
  0xf2   : > { %1030 = vmatpush3.bf16.msra.mxu0 %v1029_v18  ;;  %934 = vmatprep.mubr.msk.f32.mxu0 %vm1330_vm0, %v1329_v9  ;;  %v810_v18 = vld [vmem:[%s1606_s5] ss:$0 sm:$0xff] }
  0xf3   : > { %1031 = vmatprep.subr.bf16.mxu0 %v1328_v1  ;;  %969 = vmatprep.mubr.msk.f32.mxu1 %vm1330_vm0, %v1329_v9  ;;  %v1044_v9 = vpack.c.bf16 %v500_v34, %v499_v33 }
  0xf4   : > { %1054 = vmatpush3.bf16.msra.mxu1 %v1053_v44 }
  0xf5   : > { %1055 = vmatprep.subr.bf16.mxu1 %v1328_v1 }
  0xf6   : > { %1033 = vmatpush3.bf16.msra.mxu0 %v1032_v23 }
  0xf7   : > { %1034 = vmatprep.subr.bf16.mxu0 %v1328_v1 }
  0xf8   : > { %1057 = vmatpush3.bf16.msra.mxu1 %v1056_v46 }
  0xf9   : > { %1058 = vmatprep.subr.bf16.mxu1 %v1328_v1 }
  0xfa   : > { %1036 = vmatpush3.bf16.msra.mxu0 %v1035_v26 }
  0xfb   : > { %1037 = vmatprep.subr.bf16.mxu0 %v1328_v1 }
  0xfc   : > { %1060 = vmatpush3.bf16.msra.mxu1 %v1059_v49 }
  0xfd   : > { %1061 = vmatprep.subr.bf16.mxu1 %v1328_v1 }
  0xfe   : > { %1039 = vmatpush3.bf16.msra.mxu0 %v1038_v29 }
  0xff   : > { %1040 = vmatprep.subr.bf16.mxu0 %v1328_v1 }
 0x100   : > { %1063 = vmatpush3.bf16.msra.mxu1 %v1062_v52 }
 0x101   : > { %1064 = vmatprep.subr.bf16.mxu1 %v1328_v1 }
 0x102   : > { %1042 = vmatpush3.bf16.msra.mxu0 %v1041_v32 }
 0x103   : > { %1043 = vmatprep.subr.bf16.mxu0 %v1328_v1 }
 0x104   : > { %1066 = vmatpush3.bf16.msra.mxu1 %v1065_v0 }
 0x105   : > { %1067 = vmatprep.subr.bf16.mxu1 %v1328_v1 }
 0x106   : > { %1045 = vmatpush3.bf16.msra.mxu0 %v1044_v9 }
 0x107   : > { %1046 = vmatprep.subr.bf16.mxu0 %v1328_v1 }
 0x108   : > { %1069 = vmatpush3.bf16.msra.mxu1 %v1068_v4 }
 0x109   : > { %1070 = vmatprep.subr.bf16.mxu1 %v1328_v1 }
 0x10a   : > { %1048 = vmatpush3.bf16.msra.mxu0 %v1047_v37 }
 0x10b   : > { %1049 = vmatprep.subr.bf16.mxu0 %v1328_v1 }
 0x10c   : > { %1072 = vmatpush3.bf16.msra.mxu1 %v1071_v7 }
 0x10d   : > { %1073 = vmatprep.subr.bf16.mxu1 %v1328_v1 }
 0x10e   : > { %1051 = vmatpush3.bf16.msra.mxu0 %v1050_v40 }
 0x110   : > { %1075 = vmatpush3.bf16.msra.mxu1 %v1074_v11 }
 0x1c4   : > { %v414_v53 = vpop.f32.mrb[0].mxu0  ;;  %v485_v54 = vpop.f32.mrb[0].mxu1 }
 0x1c5   : > { %v811_v55 = vmul.f32 -1.442695, %v485_v54  ;;  %v416_v56 = vpop.f32.mrb[1].mxu0  ;;  %v901_v57 = vpop.f32.mrb[1].mxu1  ;;  %935 = vmatmul.mubr.f32.vlgmr.msra.gmra.mrb[2].mxu0 %v414_v53 }
 0x1c7   : > { %1156 = vpow2.f32 %v811_v55 }
 0x1d1   : > { %v1157_v58 = vpop.eup %1156 }
 0x1d2   : > { %v682_v59 = vadd.f32 1.0, %v1157_v58 }
 0x1d4   : > { %1158 = vrcp.f32 %v682_v59 }
 0x1de   : > { %v1159_v60 = vpop.eup %1158 }
 0x1df   : > { %v687_v61 = vmul.f32 %v1159_v60, %v416_v56  ;;  %v685_v23 = vsub.f32 1.0, %v1159_v60 }
 0x298   : > { %v578_v13 = vpop.f32.mrb[2].mxu0 }
 0x299   : > { %v579_v14 = vadd.f32 %v809_v12, %v578_v13  ;;  %v936_v15 = vpop.f32.mrb[3].mxu0 }
 0x29b   : > { %1160 = vtanh.f32 %v579_v14 }
 0x2a5   : > { %v1161_v16 = vpop.eup %1160 }
 0x2a6   : > { %v583_v17 = vadd.f32 %v1161_v16, %v414_v53 }
 0x2a8   : > { %970 = vmatmul.mubr.f32.vlgmr.msra.gmra.mrb[2].mxu1 %v583_v17 }
 0x37b   : > { %v673_v19 = vpop.f32.mrb[2].mxu1 }
 0x37c   : > { %v674_v20 = vadd.f32 %v810_v18, %v673_v19  ;;  %v971_v1 = vpop.f32.mrb[3].mxu1 }
 0x37e   : > { %1162 = vtanh.f32 %v674_v20 }
 0x388   : > { %v1163_v21 = vpop.eup %1162 }
 0x389   : > { %v678_v22 = vadd.f32 %v1163_v21, %v583_v17 }
 0x38b   : > { %v686_v24 = vmul.f32 %v685_v23, %v678_v22 }
 0x38d   : > { %v688_v25 = vadd.f32 %v687_v61, %v686_v24 }
 0x38f   : > { %689 = vst [vmem:[%s286_s14] sm:$0xff] %v688_v25 }
 0x390   : > { %1261 = shalt.err (!%p1258_p11)
}
 0x391   : > { %s1262_s16 = scalar_lea.hbm %s1559_s13, 128  ;;  %s1266_s19 = scalar_lea.hbm %s1607_s6, 256 }
 0x392   : > { %p1263_p5 = scmp.ne.s32.totalorder %s1559_s13, %s1262_s16  ;;  %p1267_p9 = scmp.lt.u32.totalorder %s1559_s13, %s1607_s6 }
 0x393   : > { %p1268_p10 = scmp.lt.u32.totalorder %s1266_s19, %s1262_s16  ;;  %p1270_p12 = scmp.lt.u32.totalorder %s1262_s16, %s1559_s13 }
 0x394   : > { %p1264_p0 = pnand %p1263_p5, %p1628_p1 }
 0x395   : > { %p1269_p13 = por %p1268_p10, %p1267_p9 }
 0x396   : > { %p1265_p6 = pneg %p1264_p0 }
 0x397   : > { %p1271_p2 = por %p1270_p12, %p1269_p13 }
 0x399   : > { %p1272_p3 = pnand %p1271_p2, %p1265_p6 }
 0x39b   : > { %1275 = shalt.err (!%p1272_p3)
}
 0x39c   : > { %1088 = dma.vmem_to_hbm [thread:$0]  (%p1628_p1), %s1561_s10, 128, %s1559_s13, %s691_s9  }
 0x39d PF: > { %p1110_p4 = scmp.ge.s32.totalorder %s1318_s24, 2  ;;  %s716_s29 = sand.u32 1, %s1306_s21  }
 0x39e   : > { %p1629_p7 = scmp.ne.s32.totalorder %s1616_s8, 0  ;;  %s717_s11 = scalar_lea.sflag [#allocation4], %s716_s29 }
 0x3a0   : > { %p1101_p8 = pnand %p1110_p4, %p1629_p7 }
 0x3a2   : > { %1301 = dma.done.wait (!%p1101_p8), %s717_s11, 128  }
 0x3a3   : > { %1303 = vsyncadd (!%p1101_p8), %s717_s11, 4294967168  ;;  %s1630_s14 = sld [smem:[#allocation12_spill]]  ;;  %p18_p11 = scmp.ge.s32.totalorder %s1393_s27, 4  }
 0x3a4   : > { %s1631_s21 = smov %s1310_s22  ;;  %s1632_s22 = smov %s1314_s23 }
 0x3a5   : > { %s1634_s24 = smov %s1393_s27  ;;  %20 = sbr.rel (!%p18_p11) target bundleno = 7 (0x7), region = 92 }
 0x3a9   : > { %s1633_s23 = smov %s1630_s14 }
 0x3ac   :  { %722 = vsyncpa [#allocation3], 1 }
 0x3ad   :  { %724 = vsyncpa [#allocation3 + $0x1], 1 }
 0x3ae   :  { %725 = vsyncpa [#allocation6], 1 }
 0x3af   :  { %726 = vsyncpa [#allocation4], 1 }
 0x3b0   :  { %728 = vsyncpa [#allocation4 + $0x1], 1 }

</bundles_post_ra>
